<compile_context>
chip_gen: v6e
topology: v6e:2x2x1
jax: 0.10.0
libtpu: 0.0.40
codegen_flags: <defaults>
</compile_context>

<pallas_src>
import jax
import jax.numpy as jnp
from jax import lax
from jax.experimental import pallas as pl
from jax.experimental.pallas import tpu as pltpu


# ----------------------------- kernel ---------------------------------------


def _rnd_kernel(x_ref, w1t_ref, b1_ref, w2t_ref, bd_ref, out_ref):
    """One batch tile.

    x_ref   : (bt, D_in)   f32    input tile, natural layout
    w1t_ref : (2H, D_in)   bf16   fused [target | predictor] layer-1 weight^T
    b1_ref  : (2H, 1)      f32    fused layer-1 bias (column)
    w2t_ref : (F, 2H)      bf16   fused "difference" layer-2 weight^T
    bd_ref  : (F, 1)       f32    pb2 - tb2 (column)
    out_ref : (1, 1, bt)   f32    per-sample sum of squared feature errors
    """
    # bf16 cast on the VPU (free while the MXU is the binding unit).  The
    # (bt, D_in) -> (D_in, bt) transpose is folded into the MXU by contracting
    # both operands' last dims (NT matmul) instead of materializing x^T.
    x_bf = x_ref[...].astype(jnp.bfloat16)                         # (bt, D_in)

    # Fused first layer for both networks: (2H, bt), f32 accumulation on MXU.
    h = lax.dot_general(
        w1t_ref[...], x_bf,
        dimension_numbers=(((1,), (1,)), ((), ())),                # contract D_in
        preferred_element_type=jnp.float32)                        # (2H, bt)
    h = jnp.maximum(h + b1_ref[...], 0.0)                          # bias + ReLU
    h = h.astype(w2t_ref.dtype)                                    # bf16 for MXU

    # Fused second layer computes (pred - target) directly, K = 2H.
    d = jnp.dot(w2t_ref[...], h, preferred_element_type=jnp.float32) + bd_ref[...]

    # Per-sample sum of squared errors.  Features sit on the sublane axis, so
    # this reduction lands lane-dense as (1, bt) -- no masked 1-lane stores.
    out_ref[0] = jnp.sum(d * d, axis=0, keepdims=True)


# ----------------------------- wrapper ---------------------------------------


def _round_up(v, m):
    return ((v + m - 1) // m) * m


def _vmem_padded_bytes(shape, itemsize):
    """VMEM footprint of one buffer, padded to hardware tiles.

    Sub-32-bit dtypes pack along sublanes, so the sublane tile is
    8 * (4 // itemsize): 8 for f32, 16 for bf16.
    """
    if len(shape) < 2:
        shape = (1,) * (2 - len(shape)) + tuple(shape)
    lead = 1
    for dim in shape[:-2]:
        lead *= dim
    sub = 8 * max(1, 4 // itemsize)
    return lead * _round_up(shape[-2], sub) * _round_up(shape[-1], 128) * itemsize


def _vmem_capacity_bytes():
    """Physical VMEM per core; conservative fallback if the query is unavailable."""
    try:
        cap = getattr(pltpu.get_tpu_info(), "vmem_capacity_bytes", None)
        if cap:
            return int(cap)
    except Exception:
        pass
    return 64 * 2**20   # v7x-sized fallback (smallest of current generations)


def _pack_params(params):
    """Fuse target + predictor weights as described at the top of the file."""
    w1t = jnp.concatenate([params["tw1"], params["pw1"]], axis=1).T   # (2H, D_in)
    b1c = jnp.concatenate([params["tb1"], params["pb1"]], axis=1).T   # (2H, 1)
    w2t = jnp.concatenate([-params["tw2"], params["pw2"]], axis=0).T  # (F, 2H)
    bdc = (params["pb2"] - params["tb2"]).T                           # (F, 1)
    return {
        "w1t": w1t.astype(jnp.bfloat16),
        "b1": b1c.astype(jnp.float32),
        "w2t": w2t.astype(jnp.bfloat16),
        "bd": bdc.astype(jnp.float32),
    }


def rnd_forward(x, params, *, batch_tile=1024):
    """Per-sample sum of squared (predictor - target) feature errors, shape (B,)."""
    B, D_in = x.shape
    H = params["tw1"].shape[1]
    F = params["tw2"].shape[1]
    H2 = 2 * H

    packed = _pack_params(params)

    # Lane-dense batch tile (multiple of 128).  Capped at round_up(ceil(B/2),
    # 128) so the grid has >= 2 iterations whenever B > 128 (feeds both v7x
    # TensorCores); large B gets the full batch_tile (default 1024) to amortize
    # per-grid-step overhead and MXU weight pushes.
    bt = max(128, min(_round_up(batch_tile, 128), _round_up(pl.cdiv(B, 2), 128)))
    B_pad = _round_up(B, bt)
    num_tiles = B_pad // bt

    x = x.astype(jnp.float32)
    if B_pad != B:
        x = jnp.pad(x, ((0, B_pad - B), (0, 0)))

    # Explicit VMEM budget: double-buffered inputs/output + in-kernel activation
    # slabs, clamped to the chip's physical capacity minus headroom.
    dbl = 2
    vmem_est = dbl * (
        _vmem_padded_bytes((bt, D_in), 4)      # x tile (f32, natural layout)
        + _vmem_padded_bytes((H2, D_in), 2)    # fused W1^T (bf16)
        + _vmem_padded_bytes((H2, 1), 4)       # fused b1 (f32)
        + _vmem_padded_bytes((F, H2), 2)       # fused diff W2^T (bf16)
        + _vmem_padded_bytes((F, 1), 4)        # diff bias (f32)
        + _vmem_padded_bytes((1, bt), 4)       # output slab (f32)
    ) + (
        _vmem_padded_bytes((bt, D_in), 2)      # x tile cast to bf16
        + _vmem_padded_bytes((H2, bt), 4)      # hidden activations (f32)
        + _vmem_padded_bytes((H2, bt), 2)      # hidden activations (bf16)
        + _vmem_padded_bytes((F, bt), 4)       # diff features (f32)
    )
    hw_cap = _vmem_capacity_bytes()
    vmem_limit = int(min(max(32 * 2**20, 2 * vmem_est + (4 << 20)),
                         max(24 * 2**20, hw_cap - (16 << 20))))

    out = pl.pallas_call(
        _rnd_kernel,
        out_shape=jax.ShapeDtypeStruct((num_tiles, 1, bt), jnp.float32),
        grid_spec=pltpu.PrefetchScalarGridSpec(
            num_scalar_prefetch=0,
            grid=(num_tiles,),
            in_specs=[
                pl.BlockSpec((bt, D_in), lambda i: (i, 0)),   # x tile (natural layout)
                # Grid-invariant weight/bias blocks (DMA'd once); default
                # double-buffering costs < 1 MiB total, so it is kept.
                pl.BlockSpec((H2, D_in), lambda i: (0, 0)),   # fused W1^T
                pl.BlockSpec((H2, 1), lambda i: (0, 0)),      # fused b1
                pl.BlockSpec((F, H2), lambda i: (0, 0)),      # fused diff W2^T
                pl.BlockSpec((F, 1), lambda i: (0, 0)),       # diff bias
            ],
            out_specs=pl.BlockSpec((1, 1, bt), lambda i: (i, 0, 0)),
        ),
        compiler_params=pltpu.CompilerParams(
            dimension_semantics=("parallel",),
            vmem_limit_bytes=vmem_limit,
        ),
    )(x, packed["w1t"], packed["b1"], packed["w2t"], packed["bd"])

    return out.reshape(-1)[:B]


# ----------------------------- params / references ---------------------------


def init_rnd_params(key, input_dim, feature_dim, hidden=256):
    """Deterministic synthetic parameter init (shapes match the nn.Linear layers)."""
    ks = jax.random.split(key, 8)

    def lin(kw, kb, fan_in, fan_out):
        bound = 1.0 / jnp.sqrt(fan_in)
        w = jax.random.uniform(kw, (fan_in, fan_out), jnp.float32, -bound, bound)
        b = jax.random.uniform(kb, (1, fan_out), jnp.float32, -bound, bound)
        return w, b

    tw1, tb1 = lin(ks[0], ks[1], input_dim, hidden)
    tw2, tb2 = lin(ks[2], ks[3], hidden, feature_dim)
    pw1, pb1 = lin(ks[4], ks[5], input_dim, hidden)
    pw2, pb2 = lin(ks[6], ks[7], hidden, feature_dim)
    return dict(tw1=tw1, tb1=tb1, tw2=tw2, tb2=tb2,
                pw1=pw1, pb1=pb1, pw2=pw2, pb2=pb2)


def rnd_reference(x, p):
    """Pure-JAX f32 reference of the PyTorch forward."""
    t = jnp.maximum(x @ p["tw1"] + p["tb1"], 0.0) @ p["tw2"] + p["tb2"]
    q = jnp.maximum(x @ p["pw1"] + p["pb1"], 0.0) @ p["pw2"] + p["pb2"]
    return jnp.sum((q - t) ** 2, axis=-1)


def rnd_reference_quantized(x, p):
    """Reference using the kernel's exact packing + bf16 input/hidden quantization."""
    packed = _pack_params(p)
    f32 = jnp.float32
    xT = x.T.astype(jnp.bfloat16).astype(f32)
    w1t = packed["w1t"].astype(f32)
    w2t = packed["w2t"].astype(f32)
    h = jnp.maximum(w1t @ xT + packed["b1"], 0.0)
    h = h.astype(jnp.bfloat16).astype(f32)
    d = w2t @ h + packed["bd"]
    return jnp.sum(d * d, axis=0)


# ----------------------------- main ------------------------------------------


if __name__ == "__main__":
    key = jax.random.PRNGKey(0)
    k_x, k_p = jax.random.split(key)

    # Non-multiple batch exercises padding and the >=2-tile (dual-TC) path.
    batch, input_dim, feature_dim = 300, 32, 32
    x = jax.random.normal(k_x, (batch, input_dim), dtype=jnp.float32)
    params = init_rnd_params(k_p, input_dim, feature_dim)

    out = jax.block_until_ready(rnd_forward(x, params))

    ref_q = rnd_reference_quantized(x, params)   # same bf16 quantization as kernel
    ref_f32 = rnd_reference(x, params)           # full-precision semantic check

    assert out.shape == (batch,)
    assert jnp.allclose(out, ref_q, rtol=2e-3, atol=2e-3), "kernel != matched reference"
    assert jnp.allclose(out, ref_f32, rtol=5e-2, atol=5e-2), "kernel != f32 reference"

    print("KERNEL_OK")
</pallas_src>

<mosaic_0001>
module attributes {stable_mosaic.version = 11 : i64} {
  func.func @_rnd_kernel(%arg0: i32, %arg1: memref<256x32xf32, #tpu.memory_space<vmem>>, %arg2: memref<512x32xbf16, #tpu.memory_space<vmem>>, %arg3: memref<512x1xf32, #tpu.memory_space<vmem>>, %arg4: memref<32x512xbf16, #tpu.memory_space<vmem>>, %arg5: memref<32x1xf32, #tpu.memory_space<vmem>>, %arg6: memref<1x1x256xf32, #tpu.memory_space<vmem>>) attributes {dimension_semantics = [#tpu.dimension_semantics<parallel>], iteration_bounds = array<i64: 2>, scalar_prefetch = 0 : i64, scratch_operands = 0 : i64, tpu.core_type = #tpu.core_type<tc>, window_params = [{transform_indices = @transform_0, window_bounds = array<i64: 256, 32>}, {pipeline_mode = #tpu.pipeline_mode<synchronous>, transform_indices = @transform_1, window_bounds = array<i64: 512, 32>}, {pipeline_mode = #tpu.pipeline_mode<synchronous>, transform_indices = @transform_2, window_bounds = array<i64: 512, 1>}, {pipeline_mode = #tpu.pipeline_mode<synchronous>, transform_indices = @transform_3, window_bounds = array<i64: 32, 512>}, {pipeline_mode = #tpu.pipeline_mode<synchronous>, transform_indices = @transform_4, window_bounds = array<i64: 32, 1>}, {transform_indices = @transform_5, window_bounds = array<i64: 1, 1, 256>}]} {
    %c0 = arith.constant 0 : index
    %c0_0 = arith.constant 0 : index
    %0 = vector.load %arg1[%c0, %c0_0] : memref<256x32xf32, #tpu.memory_space<vmem>>, vector<256x32xf32>
    %1 = arith.truncf %0 : vector<256x32xf32> to vector<256x32xbf16>
    %c0_1 = arith.constant 0 : index
    %c0_2 = arith.constant 0 : index
    %2 = vector.load %arg2[%c0_1, %c0_2] : memref<512x32xbf16, #tpu.memory_space<vmem>>, vector<512x32xbf16>
    %cst = arith.constant dense<0.000000e+00> : vector<512x256xf32>
    %3 = tpu.matmul %2, %1, %cst {dimension_numbers = #tpu.dot_dimension_numbers<[1], [1], [0], [0], [0, 0, 1, 0], [], []>} : vector<512x32xbf16>, vector<256x32xbf16>, vector<512x256xf32> -> vector<512x256xf32>
    %c0_3 = arith.constant 0 : index
    %c0_4 = arith.constant 0 : index
    %4 = vector.load %arg3[%c0_3, %c0_4] : memref<512x1xf32, #tpu.memory_space<vmem>>, vector<512x1xf32>
    %5 = vector.broadcast %4 : vector<512x1xf32> to vector<512x256xf32>
    %6 = arith.addf %3, %5 : vector<512x256xf32>
    %cst_5 = arith.constant 0.000000e+00 : f32
    %7 = vector.broadcast %cst_5 : f32 to vector<512x256xf32>
    %8 = arith.maximumf %6, %7 : vector<512x256xf32>
    %9 = arith.truncf %8 : vector<512x256xf32> to vector<512x256xbf16>
    %c0_6 = arith.constant 0 : index
    %c0_7 = arith.constant 0 : index
    %10 = vector.load %arg4[%c0_6, %c0_7] : memref<32x512xbf16, #tpu.memory_space<vmem>>, vector<32x512xbf16>
    %cst_8 = arith.constant dense<0.000000e+00> : vector<32x256xf32>
    %11 = tpu.matmul %10, %9, %cst_8 {dimension_numbers = #tpu.dot_dimension_numbers<[1], [0], [0], [1], [0, 0, 1, 1], [], []>} : vector<32x512xbf16>, vector<512x256xbf16>, vector<32x256xf32> -> vector<32x256xf32>
    %c0_9 = arith.constant 0 : index
    %c0_10 = arith.constant 0 : index
    %12 = vector.load %arg5[%c0_9, %c0_10] : memref<32x1xf32, #tpu.memory_space<vmem>>, vector<32x1xf32>
    %13 = vector.broadcast %12 : vector<32x1xf32> to vector<32x256xf32>
    %14 = arith.addf %11, %13 : vector<32x256xf32>
    %15 = arith.mulf %14, %14 : vector<32x256xf32>
    %cst_11 = arith.constant dense<0.000000e+00> : vector<256xf32>
    %16 = vector.multi_reduction <add>, %15, %cst_11 [0] : vector<32x256xf32> to vector<256xf32>
    %17 = vector.shape_cast %16 : vector<256xf32> to vector<1x256xf32>
    %c0_12 = arith.constant 0 : index
    %c0_13 = arith.constant 0 : index
    %c0_14 = arith.constant 0 : index
    %18 = vector.load %arg6[%c0_12, %c0_13, %c0_14] : memref<1x1x256xf32, #tpu.memory_space<vmem>>, vector<1x1x256xf32>
    %19 = vector.shape_cast %18 : vector<1x1x256xf32> to vector<1x256xf32>
    %20 = vector.shape_cast %17 : vector<1x256xf32> to vector<1x1x256xf32>
    tpu.vector_store %arg6[%c0_12, %c0_13, %c0_14], %20 {strides = array<i32>} : memref<1x1x256xf32, #tpu.memory_space<vmem>>, vector<1x1x256xf32>,
    return
  }
  func.func @transform_0(%arg0: i32) -> (i32, i32) {
    %c0_i32 = arith.constant 0 : i32
    %c0_i32_0 = arith.constant 0 : i32
    return %arg0, %c0_i32 : i32, i32
  }
  func.func @transform_1(%arg0: i32) -> (i32, i32) {
    %c0_i32 = arith.constant 0 : i32
    %c0_i32_0 = arith.constant 0 : i32
    %c0_i32_1 = arith.constant 0 : i32
    return %c0_i32, %c0_i32_0 : i32, i32
  }
  func.func @transform_2(%arg0: i32) -> (i32, i32) {
    %c0_i32 = arith.constant 0 : i32
    %c0_i32_0 = arith.constant 0 : i32
    %c0_i32_1 = arith.constant 0 : i32
    return %c0_i32, %c0_i32_0 : i32, i32
  }
  func.func @transform_3(%arg0: i32) -> (i32, i32) {
    %c0_i32 = arith.constant 0 : i32
    %c0_i32_0 = arith.constant 0 : i32
    %c0_i32_1 = arith.constant 0 : i32
    return %c0_i32, %c0_i32_0 : i32, i32
  }
  func.func @transform_4(%arg0: i32) -> (i32, i32) {
    %c0_i32 = arith.constant 0 : i32
    %c0_i32_0 = arith.constant 0 : i32
    %c0_i32_1 = arith.constant 0 : i32
    return %c0_i32, %c0_i32_0 : i32, i32
  }
  func.func @transform_5(%arg0: i32) -> (i32, i32, i32) {
    %c0_i32 = arith.constant 0 : i32
    %c0_i32_0 = arith.constant 0 : i32
    %c0_i32_1 = arith.constant 0 : i32
    return %arg0, %c0_i32, %c0_i32_0 : i32, i32, i32
  }
}

</mosaic_0001>

<bundles_post_ra>
// kernel: tpu_custom_call.1
= control target key start
LH: loop header
LB: loop body
LE: loop exit
PB: predicated region body
PF: predicated region fallthrough
CT: control target
= control target key end

     0   :  { %10 = vsyncpa [#allocation3], 0  ;;  %s3260_s0 = inlined_call_operand.vmem [shape: f32[512,32], index: 0, kind: input, shape index: {}]   ;;  %s3261_s1 = inlined_call_operand.vmem [shape: bf16[512,32], index: 1, kind: input, shape index: {}]   ;;  %s3262_s2 = inlined_call_operand.vmem [shape: f32[512,1], index: 2, kind: input, shape index: {}]   ;;  %s3263_s3 = inlined_call_operand.vmem [shape: bf16[32,512], index: 3, kind: input, shape index: {}]   ;;  %s3264_s4 = inlined_call_operand.vmem [shape: f32[32,1], index: 4, kind: input, shape index: {}]   ;;  %s3265_s5 = inlined_call_operand.hbm [shape: f32[2,1,256], index: 5, kind: output, shape index: {}]  }
   0x1   :  { %12 = vsyncpa [#allocation3 + $0x1], 0  ;;  %s2252_s18 = smov 0   ;;  %s2254_s19 = smov 0  }
   0x2   :  { %s2256_s20 = smov 0   ;;  %s2258_s21 = smov 0  }
   0x3 LB: > { %s1872_s22 = sadd.s32 4294967295, %s2217_s21   ;;  %s1873_s23 = sadd.s32 4294967294, %s2217_s21   ;;  %s2217_s21 = sphi %s2258_s21, %s3409_s21   ;;  %s2213_s20 = sphi %s2256_s20, %s3408_s20   ;;  %s2209_s19 = sphi %s2254_s19, %s3407_s19   ;;  %s2205_s18 = sphi %s2252_s18, %s3406_s18  }
   0x4   : > { %s2275_s24 = sadd.s32 1, %s2217_s21   ;;  %s135_s25 = sadd.s32 1, %s2213_s20 }
   0x5   : > { %s132_s26 = ssub.s32 %s2217_s21, %s2275_s24  ;;  %p145_p0 = scmp.ne.s32.totalorder %s2213_s20, %s2209_s19 }
   0x6   : > { %p133_p1 = scmp.eq.s32.totalorder %s132_s26, 0  ;;  %p146_p2 = scmp.eq.s32.totalorder %s1872_s22, 1 }
   0x7   : > { %p151_p3 = scmp.ne.s32.totalorder %s2209_s19, %s2205_s18  ;;  %p152_p4 = scmp.eq.s32.totalorder %s1873_s23, 1 }
   0x8   : > { %s2285_s27 = scalar_select %p133_p1, %s2213_s20, %s135_s25  }
   0x9   : > { %p2287_p5 = por %p146_p2, %p145_p0  ;;  %p2291_p6 = por %p152_p4, %p151_p3 }
   0xa   : > { %p1876_p7 = scmp.ge.s32.totalorder %s2217_s21, 1  ;;  %p191_p8 = scmp.lt.s32.totalorder %s2217_s21, 3 }
   0xc   : > { %p192_p9 = pnand %p1876_p7, %p191_p8 }
   0xe   : > { %195 = sbr.rel (%p192_p9) target bundleno = 759 (0x2f7), region = 40 }
  0x13   : > { %s2297_s30 = sshll.u32 %s1872_s22, 5  ;;  %vm882_vm0 = vcmask 261120   ;;  %v2303_v0 = vld [vmem:[%s3261_s1] sm:$0xff]   ;;  %v2308_v1 = vld [vmem:[%s3261_s1 + $0xa8] sm:$0xff]   ;;  %v2219_v2 = vmov 0   ;;  %v352_v3 = vld [vmem:[%s3262_s2 + $0x70] sm:$0xff] }
  0x14   : > { %p220_p10 = scmp.lt.s32.totalorder %s2297_s30, 63  ;;  %1974 = vmatprep.mubr.msk.bf16.mxu0 %vm882_vm0, %v2303_v0  ;;  %2111 = vset.pattern.permute.xlu0 %v2219_v2  ;;  %v353_v4 = vld [vmem:[%s3262_s2 + $0x78] sm:$0xff]  ;;  %v350_v24 = vld [vmem:[%s3262_s2 + $0x60] sm:$0xff]  ;;  %v348_v25 = vld [vmem:[%s3262_s2 + $0x50] sm:$0xff]  ;;  %s1812_s11 = scalar_lea.hbm %s3265_s5, %s2297_s30 }
  0x15   : > { %2016 = vmatprep.mubr.msk.bf16.mxu1 %vm882_vm0, %v2308_v1  ;;  %2112 = vset.pattern.permute.xlu1 %v2219_v2  ;;  %v351_v26 = vld [vmem:[%s3262_s2 + $0x68] sm:$0xff]  ;;  %v346_v27 = vld [vmem:[%s3262_s2 + $0x40] sm:$0xff]  ;;  %v349_v31 = vld [vmem:[%s3262_s2 + $0x58] sm:$0xff]  ;;  %s2221_s14 = smov [#allocation2]  }
  0x16   : > { %s221_s10 = scalar_select %p220_p10, %s2297_s30, 63  ;;  %474 = vperm.xlu0 %2111, %v352_v3   ;;  %464 = vperm.xlu1 %2112, %v350_v24   ;;  %v344_v32 = vld [vmem:[%s3262_s2 + $0x30] sm:$0xff]  ;;  %v347_v37 = vld [vmem:[%s3262_s2 + $0x48] sm:$0xff]  ;;  %v342_v38 = vld [vmem:[%s3262_s2 + $0x20] sm:$0xff] }
  0x17   : > { %v345_v42 = vld [vmem:[%s3262_s2 + $0x38] sm:$0xff]  ;;  %v340_v43 = vld [vmem:[%s3262_s2 + $0x10] sm:$0xff]  ;;  %v343_v48 = vld [vmem:[%s3262_s2 + $0x28] sm:$0xff]  ;;  %s2161_s15 = sshll.u32 %s2221_s14, 4  ;;  %s2162_s15 = int_to_ptr.vmem [resolvable:$false] %s2161_s15 }
  0x18   : > { %s1879_s13 = sshll.u32 %s221_s10, 3  ;;  %v338_v49 = vld [vmem:[%s3262_s2] sm:$0xff]  ;;  %v341_v53 = vld [vmem:[%s3262_s2 + $0x18] sm:$0xff]  ;;  %v368_v54 = vld [vmem:[%s3262_s2 + $0xf0] sm:$0xff]  ;;  %s2163_s17 = scalar_lea.vmem %s2162_s15, 64 }
  0x19   : > { %s2321_s16 = scalar_lea.vmem %s3260_s0, %s1879_s13  ;;  %v339_v59 = vld [vmem:[%s3262_s2 + $0x8] sm:$0xff]  ;;  %v366_v60 = vld [vmem:[%s3262_s2 + $0xe0] sm:$0xff]  ;;  %v369_v2 = vld [vmem:[%s3262_s2 + $0xf8] sm:$0xff] }
  0x1a   : > { %v256_v5 = vld [vmem:[%s2321_s16 + $0xf0] sm:$0xff]  ;;  %v257_v6 = vld [vmem:[%s2321_s16 + $0xf8] sm:$0xff]  ;;  %v254_v10 = vld [vmem:[%s2321_s16 + $0xe0] sm:$0xff]  ;;  %479 = vperm.xlu0 %2111, %v353_v4   ;;  %469 = vperm.xlu1 %2112, %v351_v26  }
  0x1b   : > { %v240_v7 = vld [vmem:[%s2321_s16 + $0x70] sm:$0xff]  ;;  %v273_v8 = vpack.c.bf16 %v257_v6, %v256_v5  ;;  %v241_v9 = vld [vmem:[%s2321_s16 + $0x78] sm:$0xff]  ;;  %v255_v11 = vld [vmem:[%s2321_s16 + $0xe8] sm:$0xff] }
  0x1c   : > { %v265_v12 = vpack.c.bf16 %v241_v9, %v240_v7  ;;  %v272_v13 = vpack.c.bf16 %v255_v11, %v254_v10  ;;  %v238_v14 = vld [vmem:[%s2321_s16 + $0x60] sm:$0xff]  ;;  %v239_v15 = vld [vmem:[%s2321_s16 + $0x68] sm:$0xff]  ;;  %v252_v18 = vld [vmem:[%s2321_s16 + $0xd0] sm:$0xff] }
  0x1d   : > { %2054 = vmatprep.subr.msk.bf16.mxu0 %vm882_vm0, %v273_v8  ;;  %2055 = vmatprep.subr.msk.bf16.mxu1 %vm882_vm0, %v273_v8  ;;  %v264_v17 = vpack.c.bf16 %v239_v15, %v238_v14  ;;  %v253_v19 = vld [vmem:[%s2321_s16 + $0xd8] sm:$0xff]  ;;  %v236_v22 = vld [vmem:[%s2321_s16 + $0x50] sm:$0xff]  ;;  %v250_v29 = vld [vmem:[%s2321_s16 + $0xc0] sm:$0xff] }
  0x1e   : > { %v1001_v16 = vsel %vm882_vm0, %v265_v12, 0  ;;  %v271_v21 = vpack.c.bf16 %v253_v19, %v252_v18  ;;  %v237_v23 = vld [vmem:[%s2321_s16 + $0x58] sm:$0xff]  ;;  %454 = vperm.xlu0 %2111, %v348_v25   ;;  %v251_v30 = vld [vmem:[%s2321_s16 + $0xc8] sm:$0xff]  ;;  %v234_v35 = vld [vmem:[%s2321_s16 + $0x40] sm:$0xff]  ;;  %459 = vperm.xlu1 %2112, %v349_v31  }
  0x1f   : > { %1959 = vmatpush3.bf16.xpose.msra.mxu0 %v1001_v16  ;;  %2046 = vmatpush3.bf16.xpose.msra.mxu1 %v1001_v16  ;;  %v998_v20 = vsel %vm882_vm0, %v264_v17, 0  ;;  %v263_v28 = vpack.c.bf16 %v237_v23, %v236_v22  ;;  %v270_v34 = vpack.c.bf16 %v251_v30, %v250_v29  ;;  %v235_v36 = vld [vmem:[%s2321_s16 + $0x48] sm:$0xff]  ;;  %v248_v40 = vld [vmem:[%s2321_s16 + $0xb0] sm:$0xff]  ;;  %v249_v41 = vld [vmem:[%s2321_s16 + $0xb8] sm:$0xff] }
  0x20   : > { %2056 = vmatprep.subr.msk.bf16.mxu0 %vm882_vm0, %v272_v13  ;;  %2057 = vmatprep.subr.msk.bf16.mxu1 %vm882_vm0, %v272_v13  ;;  %v262_v39 = vpack.c.bf16 %v235_v36, %v234_v35  ;;  %v269_v45 = vpack.c.bf16 %v249_v41, %v248_v40  ;;  %v232_v46 = vld [vmem:[%s2321_s16 + $0x30] sm:$0xff]  ;;  %v233_v47 = vld [vmem:[%s2321_s16 + $0x38] sm:$0xff]  ;;  %v246_v51 = vld [vmem:[%s2321_s16 + $0xa0] sm:$0xff] }
  0x21   : > { %v995_v33 = vsel %vm882_vm0, %v263_v28, 0  ;;  %v261_v50 = vpack.c.bf16 %v233_v47, %v232_v46  ;;  %v247_v52 = vld [vmem:[%s2321_s16 + $0xa8] sm:$0xff]  ;;  %v230_v57 = vld [vmem:[%s2321_s16 + $0x20] sm:$0xff]  ;;  %v244_v62 = vld [vmem:[%s2321_s16 + $0x90] sm:$0xff] }
  0x22   : > { %444 = vperm.xlu0 %2111, %v346_v27   ;;  %449 = vperm.xlu1 %2112, %v347_v37   ;;  %v992_v44 = vsel %vm882_vm0, %v262_v39, 0  ;;  %v268_v56 = vpack.c.bf16 %v247_v52, %v246_v51  ;;  %v231_v58 = vld [vmem:[%s2321_s16 + $0x28] sm:$0xff]  ;;  %v245_v63 = vld [vmem:[%s2321_s16 + $0x98] sm:$0xff]  ;;  %v364_v3 = vld [vmem:[%s3262_s2 + $0xd0] sm:$0xff] }
  0x23   : > { %v989_v55 = vsel %vm882_vm0, %v261_v50, 0  ;;  %v260_v61 = vpack.c.bf16 %v231_v58, %v230_v57  ;;  %v267_v5 = vpack.c.bf16 %v245_v63, %v244_v62  ;;  %v228_v6 = vld [vmem:[%s2321_s16 + $0x10] sm:$0xff]  ;;  %v229_v7 = vld [vmem:[%s2321_s16 + $0x18] sm:$0xff]  ;;  %v367_v8 = vld [vmem:[%s3262_s2 + $0xe8] sm:$0xff] }
  0x24   : > { %v242_v9 = vld [vmem:[%s2321_s16 + $0x80] sm:$0xff]  ;;  %v243_v10 = vld [vmem:[%s2321_s16 + $0x88] sm:$0xff]  ;;  %v259_v12 = vpack.c.bf16 %v229_v7, %v228_v6  ;;  %v365_v13 = vld [vmem:[%s3262_s2 + $0xd8] sm:$0xff] }
  0x25   : > { %v986_v4 = vsel %vm882_vm0, %v260_v61, 0  ;;  %v362_v11 = vld [vmem:[%s3262_s2 + $0xc0] sm:$0xff]  ;;  %v360_v14 = vld [vmem:[%s3262_s2 + $0xb0] sm:$0xff]  ;;  %v227_v16 = vld [vmem:[%s2321_s16 + $0x8] sm:$0xff]  ;;  %v266_v18 = vpack.c.bf16 %v243_v10, %v242_v9 }
  0x26   : > { %434 = vperm.xlu0 %2111, %v344_v32   ;;  %439 = vperm.xlu1 %2112, %v345_v42   ;;  %v226_v15 = vld [vmem:[%s2321_s16] sm:$0xff]  ;;  %v983_v17 = vsel %vm882_vm0, %v259_v12, 0  ;;  %v363_v19 = vld [vmem:[%s3262_s2 + $0xc8] sm:$0xff]  ;;  %v361_v22 = vld [vmem:[%s3262_s2 + $0xb8] sm:$0xff]  ;;  %s216_s16 = sand.u32 1, %s2209_s19  }
  0x27   : > { %1961 = vmatpush3.bf16.xpose.msra.mxu0 %v998_v20  ;;  %2047 = vmatpush3.bf16.xpose.msra.mxu1 %v998_v20  ;;  %v358_v20 = vld [vmem:[%s3262_s2 + $0xa0] sm:$0xff]  ;;  %v356_v23 = vld [vmem:[%s3262_s2 + $0x90] sm:$0xff]  ;;  %v359_v25 = vld [vmem:[%s3262_s2 + $0xa8] sm:$0xff]  ;;  %s1877_s6 = sshll.u32 %s216_s16, 1  ;;  %s1800_s12 = scalar_lea.sflag [#allocation3], %s216_s16 }
  0x28   : > { %2058 = vmatprep.subr.msk.bf16.mxu0 %vm882_vm0, %v271_v21  ;;  %2059 = vmatprep.subr.msk.bf16.mxu1 %vm882_vm0, %v271_v21  ;;  %v258_v21 = vpack.c.bf16 %v227_v16, %v226_v15  ;;  %v354_v26 = vld [vmem:[%s3262_s2 + $0x80] sm:$0xff]  ;;  %v357_v27 = vld [vmem:[%s3262_s2 + $0x98] sm:$0xff]  ;;  %v2115_v28 = vld [vmem:[%s3261_s1 + $0x8] sm:$0xff]   ;;  %s218_s7 = scalar_lea.vmem [#allocation2], %s1877_s6 }
  0x29   : > { %v2116_v29 = vld [vmem:[%s3261_s1 + $0xb0] sm:$0xff]   ;;  %v355_v31 = vld [vmem:[%s3262_s2 + $0x88] sm:$0xff]  ;;  %v382_v32 = vld [vmem:[%s3262_s2 + $0x160] sm:$0xff]  ;;  %s1814_s8 = sshll.u32 %s218_s7, 4  ;;  %s1815_s8 = int_to_ptr.vmem [resolvable:$true] %s1814_s8 }
  0x2a   : > { %424 = vperm.xlu0 %2111, %v342_v38   ;;  %429 = vperm.xlu1 %2112, %v343_v48   ;;  %v980_v24 = vsel %vm882_vm0, %v258_v21, 0  ;;  %v384_v30 = vld [vmem:[%s3262_s2 + $0x170] sm:$0xff]  ;;  %v383_v35 = vld [vmem:[%s3262_s2 + $0x168] sm:$0xff]  ;;  %v378_v36 = vld [vmem:[%s3262_s2 + $0x140] sm:$0xff]  ;;  %s2157_s13 = scalar_lea.vmem %s1815_s8, 32  ;;  %p2164_p0 = scmp.lt.s32.totalorder %s1815_s8, %s2162_s15 }
  0x2b   : > { %v381_v37 = vld [vmem:[%s3262_s2 + $0x158] sm:$0xff]  ;;  %v2120_v39 = vld [vmem:[%s3261_s1 + $0xc0] sm:$0xff]   ;;  %v376_v40 = vld [vmem:[%s3262_s2 + $0x130] sm:$0xff]  ;;  %p2158_p11 = scmp.ne.s32.totalorder %s1815_s8, %s2157_s13  ;;  %p2165_p1 = scmp.lt.s32.totalorder %s2163_s17, %s2157_s13 }
  0x2c   : > { %v2119_v38 = vld [vmem:[%s3261_s1 + $0x18] sm:$0xff]   ;;  %v379_v41 = vld [vmem:[%s3262_s2 + $0x148] sm:$0xff]  ;;  %v374_v42 = vld [vmem:[%s3262_s2 + $0x120] sm:$0xff] }
  0x2d   : > { %v372_v46 = vld [vmem:[%s3262_s2 + $0x110] sm:$0xff]  ;;  %v375_v47 = vld [vmem:[%s3262_s2 + $0x128] sm:$0xff]  ;;  %v370_v48 = vld [vmem:[%s3262_s2 + $0x100] sm:$0xff]  ;;  %p2159_p12 = pnand %p2158_p11, %p2287_p5  ;;  %p2166_p2 = por %p2165_p1, %p2164_p0 }
  0x2e   : > { %414 = vperm.xlu0 %2111, %v340_v43   ;;  %419 = vperm.xlu1 %2112, %v341_v53   ;;  %v377_v43 = vld [vmem:[%s3262_s2 + $0x138] sm:$0xff]  ;;  %v2123_v50 = vld [vmem:[%s3261_s1 + $0x28] sm:$0xff]   ;;  %v2124_v51 = vld [vmem:[%s3261_s1 + $0xd0] sm:$0xff]  }
  0x2f   : > { %1963 = vmatpush3.bf16.xpose.msra.mxu0 %v995_v33  ;;  %2048 = vmatpush3.bf16.xpose.msra.mxu1 %v995_v33  ;;  %v2118_v33 = vld [vmem:[%s3261_s1 + $0xb8] sm:$0xff]   ;;  %v400_v52 = vld [vmem:[%s3262_s2 + $0x1f0] sm:$0xff]  ;;  %v371_v53 = vld [vmem:[%s3262_s2 + $0x108] sm:$0xff]  ;;  %p2160_p13 = pneg %p2159_p12 }
  0x30   : > { %2060 = vmatprep.subr.msk.bf16.mxu0 %vm882_vm0, %v270_v34  ;;  %2061 = vmatprep.subr.msk.bf16.mxu1 %vm882_vm0, %v270_v34  ;;  %v380_v34 = vld [vmem:[%s3262_s2 + $0x150] sm:$0xff]  ;;  %v2126_v57 = vld [vmem:[%s3261_s1 + $0xd8] sm:$0xff]   ;;  %v2128_v63 = vld [vmem:[%s3261_s1 + $0xe0] sm:$0xff]  }
  0x31   : > { %v396_v58 = vld [vmem:[%s3262_s2 + $0x1d0] sm:$0xff]  ;;  %v397_v61 = vld [vmem:[%s3262_s2 + $0x1d8] sm:$0xff]  ;;  %v2129_v6 = vld [vmem:[%s3261_s1 + $0x40] sm:$0xff]   ;;  %p2167_p3 = pnand %p2166_p2, %p2160_p13 }
  0x32   : > { %404 = vperm.xlu0 %2111, %v338_v49   ;;  %409 = vperm.xlu1 %2112, %v339_v59   ;;  %v373_v49 = vld [vmem:[%s3262_s2 + $0x118] sm:$0xff]  ;;  %v399_v59 = vld [vmem:[%s3262_s2 + $0x1e8] sm:$0xff]  ;;  %v1580_v16 = vld [vmem:[%s3264_s4] sm:$0xff] }
  0x33   : > { %v2127_v62 = vld [vmem:[%s3261_s1 + $0x38] sm:$0xff]   ;;  %v2130_v7 = vld [vmem:[%s3261_s1 + $0xe8] sm:$0xff]  }
  0x34   : > { %v391_v10 = vld [vmem:[%s3262_s2 + $0x1a8] sm:$0xff]  ;;  %v389_v12 = vld [vmem:[%s3262_s2 + $0x198] sm:$0xff] }
  0x35   : > { %v1581_v21 = vld [vmem:[%s3264_s4 + $0x8] sm:$0xff] }
  0x36   : > { %554 = vperm.xlu0 %2111, %v368_v54   ;;  %559 = vperm.xlu1 %2112, %v369_v2   ;;  %v398_v54 = vld [vmem:[%s3262_s2 + $0x1e0] sm:$0xff]  ;;  %v392_v2 = vld [vmem:[%s3262_s2 + $0x1b0] sm:$0xff] }
  0x37   : > { %1965 = vmatpush3.bf16.xpose.msra.mxu0 %v992_v44  ;;  %2049 = vmatpush3.bf16.xpose.msra.mxu1 %v992_v44  ;;  %v2121_v44 = vld [vmem:[%s3261_s1 + $0x20] sm:$0xff]  }
  0x38   : > { %2062 = vmatprep.subr.msk.bf16.mxu0 %vm882_vm0, %v269_v45  ;;  %2063 = vmatprep.subr.msk.bf16.mxu1 %vm882_vm0, %v269_v45  ;;  %v2122_v45 = vld [vmem:[%s3261_s1 + $0xc8] sm:$0xff]  }
  0x3a   : > { %544 = vperm.xlu0 %2111, %v366_v60   ;;  %549 = vperm.xlu1 %2112, %v367_v8   ;;  %v394_v60 = vld [vmem:[%s3262_s2 + $0x1c0] sm:$0xff]  ;;  %v388_v8 = vld [vmem:[%s3262_s2 + $0x190] sm:$0xff] }
  0x3e   : > { %534 = vperm.xlu0 %2111, %v364_v3   ;;  %539 = vperm.xlu1 %2112, %v365_v13   ;;  %v395_v3 = vld [vmem:[%s3262_s2 + $0x1c8] sm:$0xff] }
  0x3f   : > { %1967 = vmatpush3.bf16.xpose.msra.mxu0 %v989_v55  ;;  %2050 = vmatpush3.bf16.xpose.msra.mxu1 %v989_v55  ;;  %v401_v55 = vld [vmem:[%s3262_s2 + $0x1f8] sm:$0xff]  ;;  %v2131_v13 = vld [vmem:[%s3261_s1 + $0x48] sm:$0xff]  }
  0x40   : > { %2064 = vmatprep.subr.msk.bf16.mxu0 %vm882_vm0, %v268_v56  ;;  %2065 = vmatprep.subr.msk.bf16.mxu1 %vm882_vm0, %v268_v56  ;;  %v2125_v56 = vld [vmem:[%s3261_s1 + $0x30] sm:$0xff]  }
  0x42   : > { %524 = vperm.xlu0 %2111, %v362_v11   ;;  %529 = vperm.xlu1 %2112, %v363_v19   ;;  %v386_v11 = vld [vmem:[%s3262_s2 + $0x180] sm:$0xff] }
  0x46   : > { %514 = vperm.xlu0 %2111, %v360_v14   ;;  %519 = vperm.xlu1 %2112, %v361_v22   ;;  %v2132_v14 = vld [vmem:[%s3261_s1 + $0xf0] sm:$0xff]  }
  0x47   : > { %1969 = vmatpush3.bf16.xpose.msra.mxu0 %v986_v4  ;;  %2051 = vmatpush3.bf16.xpose.msra.mxu1 %v986_v4  ;;  %v390_v4 = vld [vmem:[%s3262_s2 + $0x1a0] sm:$0xff]  ;;  %v2133_v22 = vld [vmem:[%s3261_s1 + $0x50] sm:$0xff]  }
  0x48   : > { %2066 = vmatprep.subr.msk.bf16.mxu0 %vm882_vm0, %v267_v5  ;;  %2067 = vmatprep.subr.msk.bf16.mxu1 %vm882_vm0, %v267_v5  ;;  %v393_v5 = vld [vmem:[%s3262_s2 + $0x1b8] sm:$0xff] }
  0x4a   : > { %504 = vperm.xlu0 %2111, %v358_v20   ;;  %509 = vperm.xlu1 %2112, %v359_v25   ;;  %v1582_v20 = vld [vmem:[%s3264_s4 + $0x10] sm:$0xff] }
  0x4e   : > { %494 = vperm.xlu0 %2111, %v356_v23   ;;  %499 = vperm.xlu1 %2112, %v357_v27   ;;  %v2134_v23 = vld [vmem:[%s3261_s1 + $0xf8] sm:$0xff]  }
  0x4f   : > { %1971 = vmatpush3.bf16.xpose.msra.mxu0 %v983_v17  ;;  %2052 = vmatpush3.bf16.xpose.msra.mxu1 %v983_v17  ;;  %v387_v17 = vld [vmem:[%s3262_s2 + $0x188] sm:$0xff] }
  0x50   : > { %2068 = vmatprep.subr.msk.bf16.mxu0 %vm882_vm0, %v266_v18  ;;  %2069 = vmatprep.subr.msk.bf16.mxu1 %vm882_vm0, %v266_v18 }
  0x52   : > { %484 = vperm.xlu0 %2111, %v354_v26   ;;  %489 = vperm.xlu1 %2112, %v355_v31   ;;  %v1583_v26 = vld [vmem:[%s3264_s4 + $0x18] sm:$0xff] }
  0x56   : > { %634 = vperm.xlu0 %2111, %v384_v30  }
  0x57   : > { %1973 = vmatpush3.bf16.xpose.msra.mxu0 %v980_v24  ;;  %2053 = vmatpush3.bf16.xpose.msra.mxu1 %v980_v24 }
  0x5a   : > { %624 = vperm.xlu0 %2111, %v382_v32  }
  0x5e   : > { %1975 = vmatmul.mubr.msk.bf16.vlgmr.msra.gmra.mxu0 %vm882_vm0, %v2303_v0  ;;  %2017 = vmatmul.mubr.msk.bf16.vlgmr.msra.gmra.mxu1 %vm882_vm0, %v2308_v1  ;;  %v385_v0 = vld [vmem:[%s3262_s2 + $0x178] sm:$0xff]  ;;  %v2117_v1 = vld [vmem:[%s3261_s1 + $0x10] sm:$0xff]  }
  0x5f   : > { %1976 = vmatprep.mubr.msk.bf16.mxu0 %vm882_vm0, %v2115_v28  ;;  %2018 = vmatprep.mubr.msk.bf16.mxu1 %vm882_vm0, %v2116_v29 }
  0x60   : > { %639 = vperm.xlu1 %2112, %v385_v0   ;;  %614 = vperm.xlu0 %2111, %v380_v34  }
  0x64   : > { %629 = vperm.xlu1 %2112, %v383_v35   ;;  %604 = vperm.xlu0 %2111, %v378_v36  }
  0x66   : > { %1977 = vmatmul.mubr.msk.bf16.gmra.mxu0 %vm882_vm0, %v2115_v28  ;;  %2019 = vmatmul.mubr.msk.bf16.gmra.mxu1 %vm882_vm0, %v2116_v29  ;;  %v2135_v29 = vld [vmem:[%s3261_s1 + $0x58] sm:$0xff]  }
  0x67   : > { %1978 = vmatprep.mubr.msk.bf16.mxu0 %vm882_vm0, %v2117_v1  ;;  %2020 = vmatprep.mubr.msk.bf16.mxu1 %vm882_vm0, %v2118_v33 }
  0x68   : > { %619 = vperm.xlu1 %2112, %v381_v37   ;;  %594 = vperm.xlu0 %2111, %v376_v40   ;;  %v2137_v37 = vld [vmem:[%s3261_s1 + $0x68] sm:$0xff]  }
  0x6c   : > { %609 = vperm.xlu1 %2112, %v379_v41   ;;  %584 = vperm.xlu0 %2111, %v374_v42   ;;  %v2138_v42 = vld [vmem:[%s3261_s1 + $0x70] sm:$0xff]  }
  0x6e   : > { %1979 = vmatmul.mubr.msk.bf16.gmra.mxu0 %vm882_vm0, %v2117_v1  ;;  %2021 = vmatmul.mubr.msk.bf16.gmra.mxu1 %vm882_vm0, %v2118_v33  ;;  %v2136_v1 = vld [vmem:[%s3261_s1 + $0x60] sm:$0xff]  }
  0x6f   : > { %1980 = vmatprep.mubr.msk.bf16.mxu0 %vm882_vm0, %v2119_v38  ;;  %2022 = vmatprep.mubr.msk.bf16.mxu1 %vm882_vm0, %v2120_v39 }
  0x70   : > { %599 = vperm.xlu1 %2112, %v377_v43   ;;  %574 = vperm.xlu0 %2111, %v372_v46  }
  0x74   : > { %589 = vperm.xlu1 %2112, %v375_v47   ;;  %564 = vperm.xlu0 %2111, %v370_v48   ;;  %v2139_v47 = vld [vmem:[%s3261_s1 + $0x78] sm:$0xff]  }
  0x76   : > { %1981 = vmatmul.mubr.msk.bf16.gmra.mxu0 %vm882_vm0, %v2119_v38  ;;  %2023 = vmatmul.mubr.msk.bf16.gmra.mxu1 %vm882_vm0, %v2120_v39 }
  0x77   : > { %1982 = vmatprep.mubr.msk.bf16.mxu0 %vm882_vm0, %v2121_v44  ;;  %2024 = vmatprep.mubr.msk.bf16.mxu1 %vm882_vm0, %v2122_v45 }
  0x78   : > { %579 = vperm.xlu1 %2112, %v373_v49   ;;  %714 = vperm.xlu0 %2111, %v400_v52   ;;  %v2140_v52 = vld [vmem:[%s3261_s1 + $0x80] sm:$0xff]  }
  0x7c   : > { %569 = vperm.xlu1 %2112, %v371_v53   ;;  %704 = vperm.xlu0 %2111, %v398_v54  }
  0x7e   : > { %1983 = vmatmul.mubr.msk.bf16.gmra.mxu0 %vm882_vm0, %v2121_v44  ;;  %2025 = vmatmul.mubr.msk.bf16.gmra.mxu1 %vm882_vm0, %v2122_v45 }
  0x7f   : > { %1984 = vmatprep.mubr.msk.bf16.mxu0 %vm882_vm0, %v2123_v50  ;;  %2026 = vmatprep.mubr.msk.bf16.mxu1 %vm882_vm0, %v2124_v51 }
  0x80   : > { %719 = vperm.xlu1 %2112, %v401_v55   ;;  %694 = vperm.xlu0 %2111, %v396_v58  }
  0x84   : > { %709 = vperm.xlu1 %2112, %v399_v59   ;;  %684 = vperm.xlu0 %2111, %v394_v60   ;;  %v2142_v60 = vld [vmem:[%s3261_s1 + $0x90] sm:$0xff]  }
  0x86   : > { %1985 = vmatmul.mubr.msk.bf16.gmra.mxu0 %vm882_vm0, %v2123_v50  ;;  %2027 = vmatmul.mubr.msk.bf16.gmra.mxu1 %vm882_vm0, %v2124_v51 }
  0x87   : > { %1986 = vmatprep.mubr.msk.bf16.mxu0 %vm882_vm0, %v2125_v56  ;;  %2028 = vmatprep.mubr.msk.bf16.mxu1 %vm882_vm0, %v2126_v57 }
  0x88   : > { %699 = vperm.xlu1 %2112, %v397_v61   ;;  %674 = vperm.xlu0 %2111, %v392_v2   ;;  %v2143_v2 = vld [vmem:[%s3261_s1 + $0x98] sm:$0xff]  }
  0x8c   : > { %689 = vperm.xlu1 %2112, %v395_v3   ;;  %664 = vperm.xlu0 %2111, %v390_v4  }
  0x8e   : > { %1987 = vmatmul.mubr.msk.bf16.gmra.mxu0 %vm882_vm0, %v2125_v56  ;;  %2029 = vmatmul.mubr.msk.bf16.gmra.mxu1 %vm882_vm0, %v2126_v57  ;;  %v2141_v56 = vld [vmem:[%s3261_s1 + $0x88] sm:$0xff]  }
  0x8f   : > { %1988 = vmatprep.mubr.msk.bf16.mxu0 %vm882_vm0, %v2127_v62  ;;  %2030 = vmatprep.mubr.msk.bf16.mxu1 %vm882_vm0, %v2128_v63 }
  0x90   : > { %679 = vperm.xlu1 %2112, %v393_v5   ;;  %654 = vperm.xlu0 %2111, %v388_v8  }
  0x91   : > { %v2634_v9 = vpop.permute.xlu0 %474  ;;  %v2667_v18 = vpop.permute.xlu1 %464 }
  0x94   : > { %669 = vperm.xlu1 %2112, %v391_v10   ;;  %644 = vperm.xlu0 %2111, %v386_v11  }
  0x95   : > { %v2655_v15 = vpop.permute.xlu0 %479  ;;  %v2683_v24 = vpop.permute.xlu1 %469 }
  0x96   : > { %1989 = vmatmul.mubr.msk.bf16.gmra.mxu0 %vm882_vm0, %v2127_v62  ;;  %2031 = vmatmul.mubr.msk.bf16.gmra.mxu1 %vm882_vm0, %v2128_v63 }
  0x97   : > { %1990 = vmatprep.mubr.msk.bf16.mxu0 %vm882_vm0, %v2129_v6  ;;  %2032 = vmatprep.mubr.msk.bf16.mxu1 %vm882_vm0, %v2130_v7 }
  0x98   : > { %659 = vperm.xlu1 %2112, %v389_v12   ;;  %1586 = vperm.xlu0 %2111, %v1580_v16  }
  0x99   : > { %v2669_v19 = vpop.permute.xlu0 %454  ;;  %v2694_v27 = vpop.permute.xlu1 %459 }
  0x9c   : > { %649 = vperm.xlu1 %2112, %v387_v17   ;;  %1596 = vperm.xlu0 %2111, %v1582_v20  }
  0x9d   : > { %v2685_v25 = vpop.permute.xlu0 %444  ;;  %v2701_v30 = vpop.permute.xlu1 %449 }
  0x9e   : > { %1991 = vmatmul.mubr.msk.bf16.gmra.mxu0 %vm882_vm0, %v2129_v6  ;;  %2033 = vmatmul.mubr.msk.bf16.gmra.mxu1 %vm882_vm0, %v2130_v7  ;;  %v2144_v6 = vld [vmem:[%s3261_s1 + $0xa0] sm:$0xff]  }
  0x9f   : > { %1992 = vmatprep.mubr.msk.bf16.mxu0 %vm882_vm0, %v2131_v13  ;;  %2034 = vmatprep.mubr.msk.bf16.mxu1 %vm882_vm0, %v2132_v14 }
  0xa0   : > { %1591 = vperm.xlu1 %2112, %v1581_v21  }
  0xa1   : > { %v2696_v28 = vpop.permute.xlu0 %434  ;;  %v2708_v32 = vpop.permute.xlu1 %439 }
  0xa4   : > { %1601 = vperm.xlu1 %2112, %v1583_v26  }
  0xa5   : > { %v2703_v31 = vpop.permute.xlu0 %424  ;;  %v2715_v33 = vpop.permute.xlu1 %429 }
  0xa6   : > { %1993 = vmatmul.mubr.msk.bf16.gmra.mxu0 %vm882_vm0, %v2131_v13  ;;  %2035 = vmatmul.mubr.msk.bf16.gmra.mxu1 %vm882_vm0, %v2132_v14 }
  0xa7   : > { %1994 = vmatprep.mubr.msk.bf16.mxu0 %vm882_vm0, %v2133_v22  ;;  %2036 = vmatprep.mubr.msk.bf16.mxu1 %vm882_vm0, %v2134_v23 }
  0xa9   : > { %v2710_v0 = vpop.permute.xlu0 %414  ;;  %v2721_v35 = vpop.permute.xlu1 %419 }
  0xad   : > { %v2717_v34 = vpop.permute.xlu0 %404  ;;  %v2728_v38 = vpop.permute.xlu1 %409 }
  0xae   : > { %1995 = vmatmul.mubr.msk.bf16.gmra.mxu0 %vm882_vm0, %v2133_v22  ;;  %2037 = vmatmul.mubr.msk.bf16.gmra.mxu1 %vm882_vm0, %v2134_v23 }
  0xaf   : > { %1996 = vmatprep.mubr.msk.bf16.mxu0 %vm882_vm0, %v2135_v29 }
  0xb1   : > { %v2723_v36 = vpop.permute.xlu0 %554  ;;  %v2734_v40 = vpop.permute.xlu1 %559 }
  0xb5   : > { %v2730_v39 = vpop.permute.xlu0 %544  ;;  %v2741_v43 = vpop.permute.xlu1 %549 }
  0xb6   : > { %1997 = vmatmul.mubr.msk.bf16.gmra.mxu0 %vm882_vm0, %v2135_v29 }
  0xb7   : > { %1998 = vmatprep.mubr.msk.bf16.mxu0 %vm882_vm0, %v2136_v1 }
  0xb9   : > { %v2736_v41 = vpop.permute.xlu0 %534  ;;  %v2747_v45 = vpop.permute.xlu1 %539 }
  0xbd   : > { %v2743_v44 = vpop.permute.xlu0 %524  ;;  %v2754_v48 = vpop.permute.xlu1 %529 }
  0xbe   : > { %1999 = vmatmul.mubr.msk.bf16.gmra.mxu0 %vm882_vm0, %v2136_v1  ;;  %3302 = vst [vmem:[#allocation5_spill] sm:$0xff] %v2743_v44  ;;  %3304 = vst [vmem:[#allocation7_spill] sm:$0xff] %v2754_v48 }
  0xbf   : > { %2000 = vmatprep.mubr.msk.bf16.mxu0 %vm882_vm0, %v2137_v37 }
  0xc1   : > { %v2749_v46 = vpop.permute.xlu0 %514  ;;  %v2760_v50 = vpop.permute.xlu1 %519 }
  0xc2   : > { %3303 = vst [vmem:[#allocation6_spill] sm:$0xff] %v2749_v46  ;;  %3306 = vst [vmem:[#allocation9_spill] sm:$0xff] %v2760_v50 }
  0xc5   : > { %v2756_v49 = vpop.permute.xlu0 %504  ;;  %v2767_v53 = vpop.permute.xlu1 %509 }
  0xc6   : > { %2001 = vmatmul.mubr.msk.bf16.gmra.mxu0 %vm882_vm0, %v2137_v37  ;;  %3305 = vst [vmem:[#allocation8_spill] sm:$0xff] %v2756_v49  ;;  %3307 = vst [vmem:[#allocation10_spill] sm:$0xff] %v2767_v53 }
  0xc7   : > { %2002 = vmatprep.mubr.msk.bf16.mxu0 %vm882_vm0, %v2138_v42 }
  0xc9   : > { %v2762_v51 = vpop.permute.xlu0 %494  ;;  %v2773_v55 = vpop.permute.xlu1 %499 }
  0xcd   : > { %v2771_v54 = vpop.permute.xlu0 %484  ;;  %v2778_v57 = vpop.permute.xlu1 %489 }
  0xce   : > { %2003 = vmatmul.mubr.msk.bf16.gmra.mxu0 %vm882_vm0, %v2138_v42 }
  0xcf   : > { %2004 = vmatprep.mubr.msk.bf16.mxu0 %vm882_vm0, %v2139_v47 }
  0xd1   : > { %v2780_v58 = vpop.permute.xlu0 %634 }
  0xd2   : > { %3308 = vst [vmem:[#allocation11_spill] sm:$0xff] %v2780_v58 }
  0xd5   : > { %v2789_v61 = vpop.permute.xlu0 %624 }
  0xd6   : > { %2005 = vmatmul.mubr.msk.bf16.gmra.mxu0 %vm882_vm0, %v2139_v47  ;;  %3310 = vst [vmem:[#allocation13_spill] sm:$0xff] %v2789_v61 }
  0xd7   : > { %2006 = vmatprep.mubr.msk.bf16.mxu0 %vm882_vm0, %v2140_v52 }
  0xdb   : > { %v2784_v59 = vpop.permute.xlu1 %639  ;;  %v2795_v63 = vpop.permute.xlu0 %614 }
  0xdc   : > { %3309 = vst [vmem:[#allocation12_spill] sm:$0xff] %v2784_v59  ;;  %3312 = vst [vmem:[#allocation15_spill] sm:$0xff] %v2795_v63 }
  0xde   : > { %2007 = vmatmul.mubr.msk.bf16.gmra.mxu0 %vm882_vm0, %v2140_v52 }
  0xdf   : > { %2008 = vmatprep.mubr.msk.bf16.mxu0 %vm882_vm0, %v2141_v56  ;;  %v2791_v62 = vpop.permute.xlu1 %629  ;;  %v2804_v4 = vpop.permute.xlu0 %604 }
  0xe0   : > { %3311 = vst [vmem:[#allocation14_spill] sm:$0xff] %v2791_v62  ;;  %3314 = vst [vmem:[#allocation17_spill] sm:$0xff] %v2804_v4 }
  0xe3   : > { %v2800_v3 = vpop.permute.xlu1 %619  ;;  %v2811_v7 = vpop.permute.xlu0 %594 }
  0xe4   : > { %3313 = vst [vmem:[#allocation16_spill] sm:$0xff] %v2800_v3  ;;  %3316 = vst [vmem:[#allocation19_spill] sm:$0xff] %v2811_v7 }
  0xe6   : > { %2009 = vmatmul.mubr.msk.bf16.gmra.mxu0 %vm882_vm0, %v2141_v56 }
  0xe7   : > { %2010 = vmatprep.mubr.msk.bf16.mxu0 %vm882_vm0, %v2142_v60  ;;  %v2806_v5 = vpop.permute.xlu1 %609  ;;  %v2817_v10 = vpop.permute.xlu0 %584 }
  0xe8   : > { %3315 = vst [vmem:[#allocation18_spill] sm:$0xff] %v2806_v5  ;;  %3318 = vst [vmem:[#allocation21_spill] sm:$0xff] %v2817_v10 }
  0xeb   : > { %v2815_v8 = vpop.permute.xlu1 %599  ;;  %v2822_v12 = vpop.permute.xlu0 %574 }
  0xec   : > { %3317 = vst [vmem:[#allocation20_spill] sm:$0xff] %v2815_v8  ;;  %3320 = vst [vmem:[#allocation23_spill] sm:$0xff] %v2822_v12 }
  0xee   : > { %2011 = vmatmul.mubr.msk.bf16.gmra.mxu0 %vm882_vm0, %v2142_v60 }
  0xef   : > { %2012 = vmatprep.mubr.msk.bf16.mxu0 %vm882_vm0, %v2143_v2  ;;  %v2819_v11 = vpop.permute.xlu1 %589  ;;  %v2826_v14 = vpop.permute.xlu0 %564 }
  0xf0   : > { %3319 = vst [vmem:[#allocation22_spill] sm:$0xff] %v2819_v11  ;;  %3322 = vst [vmem:[#allocation25_spill] sm:$0xff] %v2826_v14 }
  0xf3   : > { %v2824_v13 = vpop.permute.xlu1 %579  ;;  %v2830_v17 = vpop.permute.xlu0 %714 }
  0xf4   : > { %3321 = vst [vmem:[#allocation24_spill] sm:$0xff] %v2824_v13  ;;  %3324 = vst [vmem:[#allocation27_spill] sm:$0xff] %v2830_v17 }
  0xf6   : > { %2013 = vmatmul.mubr.msk.bf16.gmra.mxu0 %vm882_vm0, %v2143_v2 }
  0xf7   : > { %2014 = vmatprep.mubr.msk.bf16.mxu0 %vm882_vm0, %v2144_v6  ;;  %v2828_v16 = vpop.permute.xlu1 %569  ;;  %v2834_v21 = vpop.permute.xlu0 %704 }
  0xf8   : > { %3323 = vst [vmem:[#allocation26_spill] sm:$0xff] %v2828_v16  ;;  %3326 = vst [vmem:[#allocation29_spill] sm:$0xff] %v2834_v21 }
  0xfb   : > { %v2832_v20 = vpop.permute.xlu1 %719  ;;  %v2838_v23 = vpop.permute.xlu0 %694 }
  0xfc   : > { %3325 = vst [vmem:[#allocation28_spill] sm:$0xff] %v2832_v20  ;;  %3328 = vst [vmem:[#allocation31_spill] sm:$0xff] %v2838_v23 }
  0xfe   : > { %2015 = vmatmul.mubr.msk.bf16.gmra.mxu0 %vm882_vm0, %v2144_v6 }
  0xff   : > { %v2836_v22 = vpop.permute.xlu1 %709  ;;  %v2844_v37 = vpop.permute.xlu0 %684 }
 0x100   : > { %3327 = vst [vmem:[#allocation30_spill] sm:$0xff] %v2836_v22  ;;  %3331 = vst [vmem:[#allocation34_spill] sm:$0xff] %v2844_v37 }
 0x103   : > { %v2840_v26 = vpop.permute.xlu1 %699  ;;  %v2858_v17 = vpop.permute.xlu0 %674 }
 0x104   : > { %3329 = vst [vmem:[#allocation32_spill] sm:$0xff] %v2840_v26  ;;  %3336 = vst [vmem:[#allocation39_spill] sm:$0xff] %v2858_v17 }
 0x107   : > { %v2849_v56 = vpop.permute.xlu1 %689 }
 0x108   : > { %3333 = vst [vmem:[#allocation36_spill] sm:$0xff] %v2849_v56 }
 0x10b   : > { %v2864_v13 = vpop.permute.xlu1 %679 }
 0x10c   : > { %3338 = vst [vmem:[#allocation41_spill] sm:$0xff] %v2864_v13 }
 0x11e   : > { %v1061_v29 = vpop.f32.mrf.mxu0  ;;  %v2842_v1 = vpop.f32.mrf.mxu1 }
 0x11f   : > { %3330 = vst [vmem:[#allocation33_spill] sm:$0xff] %v2842_v1  ;;  %v1062_v52 = vadd.f32 %v1061_v29, %v2717_v34 }
 0x120   : > { %v1063_v42 = vpop.f32.mrf.mxu0  ;;  %v2846_v47 = vpop.f32.mrf.mxu1 }
 0x121   : > { %3332 = vst [vmem:[#allocation35_spill] sm:$0xff] %v2846_v47  ;;  %v1064_v6 = vadd.f32 %v1063_v42, %v2717_v34  ;;  %v1380_v21 = vmax.f32 %v1062_v52, 0.0 }
 0x122   : > { %v1065_v60 = vpop.f32.mrf.mxu0  ;;  %v2851_v2 = vpop.f32.mrf.mxu1 }
 0x123   : > { %3334 = vst [vmem:[#allocation37_spill] sm:$0xff] %v2851_v2  ;;  %v1066_v23 = vadd.f32 %v1065_v60, %v2728_v38  ;;  %v1381_v56 = vmax.f32 %v1064_v6, 0.0  ;;  %v2875_v6 = vpop.permute.xlu0 %664 }
 0x124   : > { %v1067_v26 = vpop.f32.mrf.mxu0  ;;  %v2855_v22 = vpop.f32.mrf.mxu1  ;;  %3341 = vst [vmem:[#allocation44_spill] sm:$0xff] %v2875_v6 }
 0x125   : > { %3335 = vst [vmem:[#allocation38_spill] sm:$0xff] %v2855_v22  ;;  %v1382_v20 = vmax.f32 %v1066_v23, 0.0  ;;  %v1068_v37 = vadd.f32 %v1067_v26, %v2728_v38 }
 0x126   : > { %v1071_v14 = vpop.f32.mrf.mxu0  ;;  %v2860_v29 = vpop.f32.mrf.mxu1 }
 0x127   : > { %3337 = vst [vmem:[#allocation40_spill] sm:$0xff] %v2860_v29  ;;  %v2862_v16 = vpack.c.bf16 %v1382_v20, %v1380_v21  ;;  %v1383_v12 = vmax.f32 %v1068_v37, 0.0  ;;  %v1072_v23 = vadd.f32 %v1071_v14, %v2710_v0 }
 0x128   : > { %v1073_v34 = vpop.f32.mrf.mxu0  ;;  %v2866_v42 = vpop.f32.mrf.mxu1 }
 0x129   : > { %3339 = vst [vmem:[#allocation42_spill] sm:$0xff] %v2866_v42  ;;  %v2868_v60 = vpack.c.bf16 %v1383_v12, %v1381_v56  ;;  %v1074_v26 = vadd.f32 %v1073_v34, %v2710_v0  ;;  %v1384_v37 = vmax.f32 %v1072_v23, 0.0  ;;  %v2880_v12 = vpop.permute.xlu1 %669  ;;  %v655_v23 = vpop.permute.xlu0 %654 }
 0x12a   : > { %v1075_v52 = vpop.f32.mrf.mxu0  ;;  %v2871_v38 = vpop.f32.mrf.mxu1  ;;  %3343 = vst [vmem:[#allocation46_spill] sm:$0xff] %v2880_v12 }
 0x12b   : > { %3340 = vst [vmem:[#allocation43_spill] sm:$0xff] %v2871_v38  ;;  %v1076_v17 = vadd.f32 %v1075_v52, %v2721_v35  ;;  %v1385_v11 = vmax.f32 %v1074_v26, 0.0 }
 0x12c   : > { %v1077_v20 = vpop.f32.mrf.mxu0  ;;  %v2877_v21 = vpop.f32.mrf.mxu1 }
 0x12d   : > { %3342 = vst [vmem:[#allocation45_spill] sm:$0xff] %v2877_v21  ;;  %v1386_v13 = vmax.f32 %v1076_v17, 0.0  ;;  %v1078_v10 = vadd.f32 %v1077_v20, %v2721_v35  ;;  %v660_v20 = vpop.permute.xlu1 %659 }
 0x12e   : > { %v2882_v56 = vpop.f32.mrf.mxu0  ;;  %v2884_v14 = vpop.f32.mrf.mxu1 }
 0x12f   : > { %3344 = vst [vmem:[#allocation47_spill] sm:$0xff] %v2884_v14  ;;  %v2886_v7 = vpack.c.bf16 %v1386_v13, %v1384_v37  ;;  %v1387_v0 = vmax.f32 %v1078_v10, 0.0  ;;  %v645_v10 = vpop.permute.xlu0 %644 }
 0x130   : > { %v2888_v34 = vpop.f32.mrf.mxu0  ;;  %v2890_v52 = vpop.f32.mrf.mxu1 }
 0x131   : > { %3345 = vst [vmem:[#allocation48_spill] sm:$0xff] %v2890_v52  ;;  %v2892_v8 = vpack.c.bf16 %v1387_v0, %v1385_v11  ;;  %v650_v11 = vpop.permute.xlu1 %649 }
 0x132   : > { %v2894_v17 = vpop.f32.mrf.mxu0  ;;  %v2896_v35 = vpop.f32.mrf.mxu1 }
 0x133   : > { %3346 = vst [vmem:[#allocation49_spill] sm:$0xff] %v2896_v35 }
 0x134   : > { %v2898_v5 = vpop.f32.mrf.mxu0  ;;  %v2900_v4 = vpop.f32.mrf.mxu1 }
 0x135   : > { %3347 = vst [vmem:[#allocation50_spill] sm:$0xff] %v2900_v4 }
 0x136   : > { %v2902_v26 = vpop.f32.mrf.mxu0  ;;  %v1301_v13 = vpop.f32.mrf.mxu1 }
 0x137   : > { %v1302_v1 = vadd.f32 %v1301_v13, %v645_v10 }
 0x138   : > { %v2904_v37 = vpop.f32.mrf.mxu0  ;;  %v1303_v2 = vpop.f32.mrf.mxu1 }
 0x139   : > { %v1304_v3 = vadd.f32 %v1303_v2, %v645_v10  ;;  %v1476_v63 = vmax.f32 %v1302_v1, 0.0 }
 0x13a   : > { %v2906_v0 = vpop.f32.mrf.mxu0  ;;  %v1305_v22 = vpop.f32.mrf.mxu1 }
 0x13b   : > { %v1306_v38 = vadd.f32 %v1305_v22, %v650_v11  ;;  %v1477_v35 = vmax.f32 %v1304_v3, 0.0  ;;  %v2147_v22 = vld [vmem:[%s3263_s3 + $0x4] ss:$16 sps:$4 sm:$0xff]  }
 0x13c   : > { %v2908_v29 = vpop.f32.mrf.mxu0  ;;  %v1307_v47 = vpop.f32.mrf.mxu1  ;;  %1676 = vmatprep.mubr.bf16.mxu1 %v2147_v22 }
 0x13d   : > { %v1308_v21 = vadd.f32 %v1307_v47, %v650_v11  ;;  %v1478_v62 = vmax.f32 %v1306_v38, 0.0 }
 0x13e   : > { %v2910_v42 = vpop.f32.mrf.mxu0  ;;  %v1311_v61 = vpop.f32.mrf.mxu1 }
 0x13f   : > { %v1312_v13 = vadd.f32 %v1311_v61, %v655_v23  ;;  %v1479_v59 = vmax.f32 %v1308_v21, 0.0  ;;  %v2914_v52 = vpack.c.bf16 %v1478_v62, %v1476_v63 }
 0x140   : > { %v2912_v14 = vpop.f32.mrf.mxu0  ;;  %v1313_v4 = vpop.f32.mrf.mxu1 }
 0x141   : > { %3348 = vst [vmem:[#allocation51_spill] sm:$0xff] %v2914_v52  ;;  %v1314_v47 = vadd.f32 %v1313_v4, %v655_v23  ;;  %v2921_v38 = vpack.c.bf16 %v1479_v59, %v1477_v35  ;;  %v1480_v58 = vmax.f32 %v1312_v13, 0.0 }
 0x142   : > { %v2919_v2 = vpop.f32.mrf.mxu0  ;;  %v1315_v1 = vpop.f32.mrf.mxu1 }
 0x143   : > { %3349 = vst [vmem:[#allocation52_spill] sm:$0xff] %v2921_v38  ;;  %v1316_v10 = vadd.f32 %v1315_v1, %v660_v20  ;;  %v1481_v63 = vmax.f32 %v1314_v47, 0.0 }
 0x144   : > { %v1107_v3 = vpop.f32.mrf.mxu0  ;;  %v1317_v11 = vpop.f32.mrf.mxu1 }
 0x145   : > { %v1318_v49 = vadd.f32 %v1317_v11, %v660_v20  ;;  %v1482_v61 = vmax.f32 %v1316_v10, 0.0 }
 0x146   : > { %v1111_v21 = vpop.f32.mrf.mxu0  ;;  %v1321_v62 = vpop.f32.mrf.mxu1 }
 0x147   : > { %v1322_v46 = vadd.f32 %v1321_v62, %v2875_v6  ;;  %v1483_v50 = vmax.f32 %v1318_v49, 0.0  ;;  %v2926_v44 = vpack.c.bf16 %v1482_v61, %v1480_v58 }
 0x148   : > { %v1113_v52 = vpop.f32.mrf.mxu0  ;;  %v2923_v53 = vpop.f32.mrf.mxu1 }
 0x149   : > { %3350 = vst [vmem:[#allocation53_spill] sm:$0xff] %v2923_v53  ;;  %3351 = vst [vmem:[#allocation54_spill] sm:$0xff] %v2926_v44  ;;  %v2928_v23 = vpack.c.bf16 %v1483_v50, %v1481_v63  ;;  %v1484_v20 = vmax.f32 %v1322_v46, 0.0 }
 0x14a   : > { %v1115_v59 = vpop.f32.mrf.mxu0  ;;  %v1325_v4 = vpop.f32.mrf.mxu1 }
 0x14b   : > { %3352 = vst [vmem:[#allocation55_spill] sm:$0xff] %v2928_v23  ;;  %v1326_v35 = vadd.f32 %v1325_v4, %v2880_v12 }
 0x14c   : > { %v1117_v13 = vpop.f32.mrf.mxu0 }
 0x14d   : > { %v1486_v22 = vmax.f32 %v1326_v35, 0.0  ;;  %v1118_v23 = vadd.f32 %v1117_v13, %v2694_v27 }
 0x14e   : > { %v1121_v1 = vpop.f32.mrf.mxu0 }
 0x14f   : > { %v2931_v47 = vpack.c.bf16 %v1486_v22, %v1484_v20 }
 0x150   : > { %v1123_v10 = vpop.f32.mrf.mxu0 }
 0x151   : > { %3353 = vst [vmem:[#allocation56_spill] sm:$0xff] %v2931_v47  ;;  %v1124_v46 = vadd.f32 %v1123_v10, %v2667_v18 }
 0x152   : > { %v1125_v11 = vpop.f32.mrf.mxu0 }
 0x153   : > { %v1126_v20 = vadd.f32 %v1125_v11, %v2683_v24 }
 0x154   : > { %v1127_v38 = vpop.f32.mrf.mxu0 }
 0x155   : > { %v1128_v58 = vadd.f32 %v1127_v38, %v2683_v24  ;;  %v1116_v24 = vadd.f32 %v1115_v59, %v2694_v27  ;;  %v1406_v11 = vmax.f32 %v1126_v20, 0.0 }
 0x156   : > { %v1131_v53 = vpop.f32.mrf.mxu0 }
 0x157   : > { %v1132_v63 = vadd.f32 %v1131_v53, %v2634_v9  ;;  %v1407_v47 = vmax.f32 %v1128_v58, 0.0  ;;  %v1405_v53 = vmax.f32 %v1124_v46, 0.0  ;;  %v1403_v58 = vmax.f32 %v1118_v23, 0.0 }
 0x158   : > { %v1133_v62 = vpop.f32.mrf.mxu0 }
 0x159   : > { %v1134_v61 = vadd.f32 %v1133_v62, %v2634_v9  ;;  %v1122_v62 = vadd.f32 %v1121_v1, %v2667_v18  ;;  %v1408_v6 = vmax.f32 %v1132_v63, 0.0  ;;  %v1114_v9 = vadd.f32 %v1113_v52, %v2669_v19 }
 0x15a   : > { %v1135_v49 = vpop.f32.mrf.mxu0  ;;  %v1098_v52 = vadd.f32 %v2908_v29, %v2708_v32 }
 0x15b   : > { %v1136_v50 = vadd.f32 %v1135_v49, %v2655_v15  ;;  %v1409_v12 = vmax.f32 %v1134_v61, 0.0  ;;  %v1521_v61 = vpack.c.bf16 %v1407_v47, %v1405_v53  ;;  %v1402_v47 = vmax.f32 %v1116_v24, 0.0 }
 0x15c   : > { %v1137_v4 = vpop.f32.mrf.mxu0  ;;  %v1395_v53 = vmax.f32 %v1098_v52, 0.0  ;;  %v1084_v24 = vadd.f32 %v2888_v34, %v2703_v31 }
 0x15d   : > { %v1138_v35 = vadd.f32 %v1137_v4, %v2655_v15  ;;  %v1410_v22 = vmax.f32 %v1136_v50, 0.0  ;;  %v1108_v15 = vadd.f32 %v1107_v3, %v2701_v30  ;;  %v1404_v3 = vmax.f32 %v1122_v62, 0.0 }
 0x15e   : > { %v1141_v44 = vpop.f32.mrf.mxu0  ;;  %v1088_v62 = vadd.f32 %v2898_v5, %v2715_v33 }
 0x15f   : > { %v1411_v38 = vmax.f32 %v1138_v35, 0.0  ;;  %v1142_v10 = vadd.f32 %v1141_v44, %v2771_v54  ;;  %v1522_v50 = vpack.c.bf16 %v1410_v22, %v1408_v6  ;;  %v1104_v44 = vadd.f32 %v2912_v14, %v2685_v25 }
 0x160   : > { %v1143_v49 = vpop.f32.mrf.mxu0  ;;  %v1401_v6 = vmax.f32 %v1114_v9, 0.0  ;;  %v1520_v29 = vpack.c.bf16 %v1406_v11, %v1404_v3  ;;  %v1092_v11 = vadd.f32 %v2902_v26, %v2696_v28 }
 0x161   : > { %v1523_v48 = vpack.c.bf16 %v1411_v38, %v1409_v12  ;;  %v1144_v4 = vadd.f32 %v1143_v49, %v2771_v54  ;;  %v1112_v12 = vadd.f32 %v1111_v21, %v2669_v19  ;;  %v1412_v59 = vmax.f32 %v1142_v10, 0.0 }
 0x162   : > { %v1145_v13 = vpop.f32.mrf.mxu0  ;;  %v1399_v54 = vmax.f32 %v1108_v15, 0.0  ;;  %v1519_v46 = vpack.c.bf16 %v1403_v58, %v1401_v6  ;;  %v1102_v21 = vadd.f32 %v2910_v42, %v2685_v25  ;;  %v1397_v38 = vmax.f32 %v1104_v44, 0.0 }
 0x163   : > { %v1146_v18 = vadd.f32 %v1145_v13, %v2778_v57  ;;  %1644 = vmatprep.subr.bf16.mxu1 %v1523_v48  ;;  %v1106_v48 = vadd.f32 %v2919_v2, %v2701_v30  ;;  %v1413_v14 = vmax.f32 %v1144_v4, 0.0  ;;  %v1400_v20 = vmax.f32 %v1112_v12, 0.0 }
 0x164   : > { %v1147_v27 = vpop.f32.mrf.mxu0  ;;  %1645 = vmatpush1.bf16.msra.mxu1 %v1522_v50  ;;  %v1096_v49 = vadd.f32 %v2906_v0, %v2708_v32  ;;  %v1517_v10 = vpack.c.bf16 %v1399_v54, %v1397_v38  ;;  %v1396_v50 = vmax.f32 %v1102_v21, 0.0  ;;  %v1082_v12 = vadd.f32 %v2882_v56, %v2703_v31 }
 0x165   : > { %v1414_v23 = vmax.f32 %v1146_v18, 0.0  ;;  %v1148_v1 = vadd.f32 %v1147_v27, %v2778_v57  ;;  %1646 = vmatprep.subr.bf16.mxu1 %v1521_v61  ;;  %v1094_v57 = vadd.f32 %v2904_v37, %v2696_v28  ;;  %v1398_v9 = vmax.f32 %v1106_v48, 0.0 }
 0x166   : > { %v1151_v63 = vpop.f32.mrf.mxu0  ;;  %v1518_v25 = vpack.c.bf16 %v1402_v47, %v1400_v20  ;;  %v1391_v61 = vmax.f32 %v1088_v62, 0.0  ;;  %v1394_v4 = vmax.f32 %v1096_v49, 0.0  ;;  %v1392_v3 = vmax.f32 %v1092_v11, 0.0 }
 0x167   : > { %v2956_v35 = vpack.c.bf16 %v1414_v23, %v1412_v59  ;;  %v1415_v19 = vmax.f32 %v1148_v1, 0.0  ;;  %v1152_v2 = vadd.f32 %v1151_v63, %v2762_v51  ;;  %v1393_v13 = vmax.f32 %v1094_v57, 0.0 }
 0x168   : > { %v1153_v22 = vpop.f32.mrf.mxu0  ;;  %1647 = vmatpush1.bf16.msra.mxu1 %v1520_v29  ;;  %v1516_v18 = vpack.c.bf16 %v1398_v9, %v1396_v50  ;;  %v1388_v1 = vmax.f32 %v1082_v12, 0.0 }
 0x169   : > { %v2962_v30 = vpack.c.bf16 %v1415_v19, %v1413_v14  ;;  %1648 = vmatprep.subr.bf16.mxu1 %v1519_v46  ;;  %v1154_v15 = vadd.f32 %v1153_v22, %v2762_v51  ;;  %v1416_v32 = vmax.f32 %v1152_v2, 0.0  ;;  %v1086_v51 = vadd.f32 %v2894_v17, %v2715_v33  ;;  %v3006_v19 = vpop.f32.mrf.mxu1 }
 0x16a   : > { %v1155_v42 = vpop.f32.mrf.mxu0  ;;  %v1515_v34 = vpack.c.bf16 %v1395_v53, %v1393_v13  ;;  %v1514_v17 = vpack.c.bf16 %v1394_v4, %v1392_v3 }
 0x16b   : > { %v1156_v37 = vadd.f32 %v1155_v42, %v2773_v55  ;;  %v1417_v44 = vmax.f32 %v1154_v15, 0.0  ;;  %v1390_v33 = vmax.f32 %v1086_v51, 0.0  ;;  %v3008_v22 = vpop.f32.mrf.mxu1 }
 0x16c   : > { %v1157_v5 = vpop.f32.mrf.mxu0  ;;  %1649 = vmatpush1.bf16.msra.mxu1 %v1518_v25 }
 0x16d   : > { %v1418_v0 = vmax.f32 %v1156_v37, 0.0  ;;  %v1158_v58 = vadd.f32 %v1157_v5, %v2773_v55  ;;  %1650 = vmatprep.subr.bf16.mxu1 %v1517_v10  ;;  %v1389_v55 = vmax.f32 %v1084_v24, 0.0  ;;  %v1512_v54 = vpack.c.bf16 %v1390_v33, %v1388_v1  ;;  %v3010_v38 = vpop.f32.mrf.mxu1  ;;  %v3354_v1 = vld [vmem:[#allocation7_spill] sm:$0xff] }
 0x16e   : > { %v2978_v52 = vpop.f32.mrf.mxu0 }
 0x16f   : > { %v2980_v28 = vpack.c.bf16 %v1418_v0, %v1416_v32  ;;  %v1419_v26 = vmax.f32 %v1158_v58, 0.0  ;;  %v1513_v23 = vpack.c.bf16 %v1391_v61, %v1389_v55  ;;  %v3012_v62 = vpop.f32.mrf.mxu1 }
 0x170   : > { %v2984_v27 = vpop.f32.mrf.mxu0  ;;  %1651 = vmatpush1.bf16.msra.mxu1 %v1516_v18 }
 0x171   : > { %v2986_v6 = vpack.c.bf16 %v1419_v26, %v1417_v44  ;;  %1652 = vmatprep.subr.bf16.mxu1 %v1515_v34  ;;  %v3014_v9 = vpop.f32.mrf.mxu1 }
 0x172   : > { %v2988_v59 = vpop.f32.mrf.mxu0 }
 0x173   : > { %v3016_v42 = vpop.f32.mrf.mxu1 }
 0x174   : > { %v2990_v48 = vpop.f32.mrf.mxu0  ;;  %1653 = vmatpush1.bf16.msra.mxu1 %v1514_v17 }
 0x175   : > { %1654 = vmatprep.subr.bf16.mxu1 %v1513_v23  ;;  %v3021_v11 = vpop.f32.mrf.mxu1 }
 0x176   : > { %v2992_v31 = vpop.f32.mrf.mxu0 }
 0x177   : > { %v3030_v44 = vpop.f32.mrf.mxu1 }
 0x178   : > { %v2994_v56 = vpop.f32.mrf.mxu0  ;;  %1655 = vmatpush1.bf16.msra.mxu1 %v1512_v54 }
 0x179   : > { %1656 = vmatprep.subr.bf16.mxu1 %v2892_v8 }
 0x17a   : > { %v2997_v47 = vpop.f32.mrf.mxu0 }
 0x17c   : > { %v2999_v29 = vpop.f32.mrf.mxu0  ;;  %1657 = vmatpush1.bf16.msra.mxu1 %v2886_v7 }
 0x17d   : > { %1658 = vmatprep.subr.bf16.mxu1 %v2868_v60 }
 0x17e   : > { %v3003_v63 = vpop.f32.mrf.mxu0 }
 0x180   : > { %v1183_v46 = vpop.f32.mrf.mxu0  ;;  %1659 = vmatpush1.bf16.msra.mxu1 %v2862_v16 }
 0x182   : > { %v1185_v14 = vpop.f32.mrf.mxu0 }
 0x184   : > { %v1187_v21 = vpop.f32.mrf.mxu0 }
 0x185   : > { %v1188_v54 = vadd.f32 %v1187_v21, %v3354_v1 }
 0x186   : > { %v1191_v20 = vpop.f32.mrf.mxu0 }
 0x188   : > { %v1193_v8 = vpop.f32.mrf.mxu0 }
 0x189   : > { %v1194_v3 = vadd.f32 %v1193_v8, %v2736_v41  ;;  %v3355_v8 = vld [vmem:[#allocation5_spill] sm:$0xff] }
 0x18a   : > { %v1195_v57 = vpop.f32.mrf.mxu0 }
 0x18c   : > { %v1197_v2 = vpop.f32.mrf.mxu0 }
 0x18d   : > { %v1198_v61 = vadd.f32 %v1197_v2, %v2747_v45 }
 0x18e   : > { %v1201_v7 = vpop.f32.mrf.mxu0 }
 0x18f   : > { %v1202_v26 = vadd.f32 %v1201_v7, %v2730_v39  ;;  %v1435_v2 = vmax.f32 %v1198_v61, 0.0 }
 0x190   : > { %v1203_v60 = vpop.f32.mrf.mxu0 }
 0x191   : > { %v1204_v13 = vadd.f32 %v1203_v60, %v2730_v39  ;;  %v1192_v39 = vadd.f32 %v1191_v20, %v2736_v41  ;;  %v1436_v7 = vmax.f32 %v1202_v26, 0.0  ;;  %v1182_v20 = vadd.f32 %v3003_v63, %v3355_v8 }
 0x192   : > { %v1205_v49 = vpop.f32.mrf.mxu0 }
 0x193   : > { %v1206_v0 = vadd.f32 %v1205_v49, %v2741_v43  ;;  %v3040_v49 = vpop.f32.mrf.mxu1 }
 0x194   : > { %v1207_v16 = vpop.f32.mrf.mxu0 }
 0x195   : > { %v1208_v15 = vadd.f32 %v1207_v16, %v2741_v43  ;;  %v1196_v43 = vadd.f32 %v1195_v57, %v2747_v45  ;;  %v1438_v33 = vmax.f32 %v1206_v0, 0.0  ;;  %v1433_v45 = vmax.f32 %v1194_v3, 0.0  ;;  %v3051_v41 = vpop.f32.mrf.mxu1 }
 0x196   : > { %v1211_v25 = vpop.f32.mrf.mxu0  ;;  %v1186_v57 = vadd.f32 %v1185_v14, %v3354_v1 }
 0x197   : > { %v1212_v50 = vadd.f32 %v1211_v25, %v2723_v36  ;;  %v1439_v4 = vmax.f32 %v1208_v15, 0.0  ;;  %v1184_v25 = vadd.f32 %v1183_v46, %v3355_v8  ;;  %v3356_v15 = vld [vmem:[#allocation9_spill] sm:$0xff]  ;;  %v3065_v26 = vpop.f32.mrf.mxu1 }
 0x198   : > { %v1213_v53 = vpop.f32.mrf.mxu0  ;;  %v1176_v0 = vadd.f32 %v2997_v47, %v3356_v15 }
 0x199   : > { %v1214_v37 = vadd.f32 %v1213_v53, %v2723_v36  ;;  %v1440_v36 = vmax.f32 %v1212_v50, 0.0  ;;  %v1434_v53 = vmax.f32 %v1196_v43, 0.0  ;;  %v1535_v50 = vpack.c.bf16 %v1435_v2, %v1433_v45  ;;  %v3077_v2 = vpop.f32.mrf.mxu1 }
 0x19a   : > { %v1215_v10 = vpop.f32.mrf.mxu0 }
 0x19b   : > { %v1216_v24 = vadd.f32 %v1215_v10, %v2734_v40  ;;  %v1441_v18 = vmax.f32 %v1214_v37, 0.0  ;;  %v1536_v10 = vpack.c.bf16 %v1438_v33, %v1436_v7  ;;  %v1178_v37 = vadd.f32 %v2999_v29, %v3356_v15  ;;  %v3085_v45 = vpop.f32.mrf.mxu1  ;;  %v3360_v15 = vld [vmem:[#allocation11_spill] sm:$0xff] }
 0x19c   : > { %v1217_v5 = vpop.f32.mrf.mxu0  ;;  %v1430_v29 = vmax.f32 %v1186_v57, 0.0 }
 0x19d   : > { %v1218_v32 = vadd.f32 %v1217_v5, %v2734_v40  ;;  %v1442_v58 = vmax.f32 %v1216_v24, 0.0  ;;  %v1437_v40 = vmax.f32 %v1204_v13, 0.0  ;;  %v1431_v24 = vmax.f32 %v1188_v54, 0.0  ;;  %v3357_v13 = vld [vmem:[#allocation6_spill] sm:$0xff] }
 0x19e   : > { %v3027_v51 = vpop.f32.mrf.mxu0  ;;  %v1432_v5 = vmax.f32 %v1192_v39, 0.0  ;;  %v1174_v14 = vadd.f32 %v2994_v56, %v3357_v13  ;;  %v1427_v63 = vmax.f32 %v1178_v37, 0.0  ;;  %v1428_v56 = vmax.f32 %v1182_v20, 0.0  ;;  %v3361_v37 = vld [vmem:[#allocation48_spill] sm:$0xff]  ;;  %v3363_v20 = vld [vmem:[#allocation50_spill] sm:$0xff] }
 0x19f   : > { %v1443_v34 = vmax.f32 %v1218_v32, 0.0  ;;  %v1538_v17 = vpack.c.bf16 %v1442_v58, %v1440_v36  ;;  %v1537_v60 = vpack.c.bf16 %v1439_v4, %v1437_v40  ;;  %v1429_v32 = vmax.f32 %v1184_v25, 0.0  ;;  %v3358_v4 = vld [vmem:[#allocation10_spill] sm:$0xff]  ;;  %v3359_v40 = vld [vmem:[#allocation8_spill] sm:$0xff] }
 0x1a0   : > { %v3033_v12 = vpop.f32.mrf.mxu0  ;;  %v1534_v58 = vpack.c.bf16 %v1434_v53, %v1432_v5  ;;  %v1172_v36 = vadd.f32 %v2992_v31, %v3357_v13  ;;  %v1164_v47 = vadd.f32 %v2984_v27, %v3359_v40  ;;  %v1166_v43 = vadd.f32 %v2988_v59, %v3358_v4  ;;  %v3095_v13 = vpop.f32.mrf.mxu1 }
 0x1a1   : > { %v1539_v55 = vpack.c.bf16 %v1443_v34, %v1441_v18  ;;  %v1168_v18 = vadd.f32 %v2990_v48, %v3358_v4  ;;  %v1533_v34 = vpack.c.bf16 %v1431_v24, %v1429_v32  ;;  %v1426_v48 = vmax.f32 %v1176_v0, 0.0  ;;  %v3364_v32 = vld [vmem:[#allocation47_spill] sm:$0xff] }
 0x1a2   : > { %v3037_v23 = vpop.f32.mrf.mxu0  ;;  %v1532_v33 = vpack.c.bf16 %v1430_v29, %v1428_v56  ;;  %v1162_v31 = vadd.f32 %v2978_v52, %v3359_v40  ;;  %v1421_v27 = vmax.f32 %v1164_v47, 0.0  ;;  %v1422_v7 = vmax.f32 %v1166_v43, 0.0  ;;  %v3365_v29 = vld [vmem:[#allocation49_spill] sm:$0xff]  ;;  %v3368_v56 = vld [vmem:[#allocation14_spill] sm:$0xff]  ;;  %v3106_v43 = vpop.f32.mrf.mxu1 }
 0x1a3   : > { %1660 = vmatprep.subr.bf16.mxu1 %v1539_v55  ;;  %v1425_v55 = vmax.f32 %v1174_v14, 0.0  ;;  %v1423_v1 = vmax.f32 %v1168_v18, 0.0  ;;  %v1294_v24 = vadd.f32 %v3361_v37, %v3360_v15  ;;  %v1292_v0 = vadd.f32 %v3364_v32, %v3360_v15  ;;  %v3366_v18 = vld [vmem:[#allocation13_spill] sm:$0xff]  ;;  %v3374_v37 = vld [vmem:[#allocation16_spill] sm:$0xff] }
 0x1a4   : > { %v3043_v16 = vpop.f32.mrf.mxu0  ;;  %1661 = vmatpush2.bf16.msra.mxu1 %v1538_v17  ;;  %v1420_v57 = vmax.f32 %v1162_v31, 0.0  ;;  %v3369_v40 = vld [vmem:[#allocation45_spill] sm:$0xff] }
 0x1a5   : > { %1662 = vmatprep.subr.bf16.mxu1 %v1537_v60  ;;  %v1531_v54 = vpack.c.bf16 %v1427_v63, %v1425_v55  ;;  %v1424_v60 = vmax.f32 %v1172_v36, 0.0  ;;  %v1529_v25 = vpack.c.bf16 %v1423_v1, %v1421_v27  ;;  %v3367_v63 = vld [vmem:[#allocation42_spill] sm:$0xff]  ;;  %v1473_v36 = vmax.f32 %v1294_v24, 0.0  ;;  %v3373_v27 = vld [vmem:[#allocation43_spill] sm:$0xff]  ;;  %v3376_v32 = vld [vmem:[#allocation33_spill] sm:$0xff] }
 0x1a6   : > { %v3047_v21 = vpop.f32.mrf.mxu0  ;;  %v1288_v47 = vadd.f32 %v3369_v40, %v3368_v56  ;;  %v3375_v24 = vld [vmem:[#allocation38_spill] sm:$0xff] }
 0x1a7   : > { %v1530_v8 = vpack.c.bf16 %v1426_v48, %v1424_v60  ;;  %v1472_v60 = vmax.f32 %v1292_v0, 0.0 }
 0x1a8   : > { %v3055_v46 = vpop.f32.mrf.mxu0  ;;  %1663 = vmatpush2.bf16.msra.mxu1 %v1536_v10  ;;  %v1528_v10 = vpack.c.bf16 %v1422_v7, %v1420_v57  ;;  %v1286_v7 = vadd.f32 %v3373_v27, %v3368_v56 }
 0x1a9   : > { %1664 = vmatprep.subr.bf16.mxu1 %v1535_v50  ;;  %v3362_v50 = vld [vmem:[#allocation12_spill] sm:$0xff] }
 0x1aa   : > { %v3061_v61 = vpop.f32.mrf.mxu0  ;;  %v1298_v5 = vadd.f32 %v3363_v20, %v3362_v50 }
 0x1ac   : > { %v3069_v3 = vpop.f32.mrf.mxu0  ;;  %1665 = vmatpush2.bf16.msra.mxu1 %v1534_v58  ;;  %v1296_v58 = vadd.f32 %v3365_v29, %v3362_v50  ;;  %v1475_v55 = vmax.f32 %v1298_v5, 0.0  ;;  %v2145_v50 = vld [vmem:[%s3263_s3] ss:$16 sps:$4 sm:$0xff]   ;;  %v2148_v5 = vld [vmem:[%s3263_s3 + $0x24] ss:$16 sps:$4 sm:$0xff]  }
 0x1ad   : > { %1666 = vmatprep.subr.bf16.mxu1 %v1533_v34  ;;  %v1284_v34 = vadd.f32 %v3367_v63, %v3366_v18  ;;  %v3377_v63 = vld [vmem:[#allocation37_spill] sm:$0xff] }
 0x1ae   : > { %v3075_v17 = vpop.f32.mrf.mxu0  ;;  %v1555_v15 = vpack.c.bf16 %v1475_v55, %v1473_v36 }
 0x1af   : > { %v1469_v57 = vmax.f32 %v1284_v34, 0.0  ;;  %v1276_v34 = vadd.f32 %v3377_v63, %v3374_v37 }
 0x1b0   : > { %v3081_v39 = vpop.f32.mrf.mxu0  ;;  %1667 = vmatpush2.bf16.msra.mxu1 %v1532_v33  ;;  %v3371_v33 = vld [vmem:[#allocation35_spill] sm:$0xff] }
 0x1b1   : > { %1668 = vmatprep.subr.bf16.mxu1 %v1531_v54  ;;  %v3372_v54 = vld [vmem:[#allocation40_spill] sm:$0xff] }
 0x1b2   : > { %v3083_v59 = vpop.f32.mrf.mxu0  ;;  %v1282_v31 = vadd.f32 %v3372_v54, %v3366_v18 }
 0x1b4   : > { %v3087_v53 = vpop.f32.mrf.mxu0  ;;  %1669 = vmatpush2.bf16.msra.mxu1 %v1530_v8  ;;  %v1474_v8 = vmax.f32 %v1296_v58, 0.0  ;;  %v1468_v29 = vmax.f32 %v1282_v31, 0.0  ;;  %v1470_v58 = vmax.f32 %v1286_v7, 0.0  ;;  %v1466_v7 = vmax.f32 %v1276_v34, 0.0 }
 0x1b5   : > { %1670 = vmatprep.subr.bf16.mxu1 %v1529_v25 }
 0x1b6   : > { %v3089_v52 = vpop.f32.mrf.mxu0  ;;  %v1554_v18 = vpack.c.bf16 %v1474_v8, %v1472_v60  ;;  %v1552_v60 = vpack.c.bf16 %v1470_v58, %v1468_v29  ;;  %v3382_v58 = vld [vmem:[#allocation22_spill] sm:$0xff] }
 0x1b8   : > { %v1253_v14 = vpop.f32.mrf.mxu0  ;;  %1671 = vmatpush2.bf16.msra.mxu1 %v1528_v10  ;;  %v1471_v10 = vmax.f32 %v1288_v47, 0.0 }
 0x1b9   : > { %1672 = vmatprep.subr.bf16.mxu1 %v2986_v6  ;;  %v3370_v6 = vld [vmem:[#allocation15_spill] sm:$0xff] }
 0x1ba   : > { %v1255_v4 = vpop.f32.mrf.mxu0  ;;  %v1274_v1 = vadd.f32 %v3371_v33, %v3370_v6  ;;  %v1272_v0 = vadd.f32 %v3376_v32, %v3370_v6  ;;  %v1553_v47 = vpack.c.bf16 %v1471_v10, %v1469_v57  ;;  %v3378_v33 = vld [vmem:[#allocation17_spill] sm:$0xff]  ;;  %v3379_v6 = vld [vmem:[#allocation18_spill] sm:$0xff] }
 0x1bb   : > { %v2150_v57 = vld [vmem:[%s3263_s3 + $0x20] ss:$16 sps:$4 sm:$0xff]  }
 0x1bc   : > { %v1257_v48 = vpop.f32.mrf.mxu0  ;;  %1673 = vmatpush2.bf16.msra.mxu1 %v2980_v28  ;;  %v1278_v28 = vadd.f32 %v3375_v24, %v3374_v37  ;;  %v1465_v56 = vmax.f32 %v1274_v1, 0.0  ;;  %v1464_v31 = vmax.f32 %v1272_v0, 0.0 }
 0x1bd   : > { %1674 = vmatprep.subr.bf16.mxu1 %v2962_v30  ;;  %v3121_v30 = vpop.f32.mrf.mxu1 }
 0x1be   : > { %v1261_v25 = vpop.f32.mrf.mxu0  ;;  %v1467_v40 = vmax.f32 %v1278_v28, 0.0  ;;  %v1550_v0 = vpack.c.bf16 %v1466_v7, %v1464_v31  ;;  %v3385_v7 = vld [vmem:[#allocation23_spill] sm:$0xff] }
 0x1bf   : > { %v1262_v28 = vadd.f32 %v1261_v25, %v3378_v33 }
 0x1c0   : > { %v1263_v20 = vpop.f32.mrf.mxu0  ;;  %1675 = vmatpush2.bf16.msra.mxu1 %v2956_v35  ;;  %v3131_v35 = vpop.f32.mrf.mxu1  ;;  %v1551_v24 = vpack.c.bf16 %v1467_v40, %v1465_v56 }
 0x1c1   : > { %1697 = vmatprep.subr.bf16.mxu1 %v1555_v15  ;;  %v1264_v54 = vadd.f32 %v1263_v20, %v3378_v33  ;;  %v3380_v15 = vld [vmem:[#allocation20_spill] sm:$0xff]  ;;  %v3381_v20 = vld [vmem:[#allocation19_spill] sm:$0xff]  ;;  %v1460_v56 = vmax.f32 %v1262_v28, 0.0 }
 0x1c2   : > { %v1265_v36 = vpop.f32.mrf.mxu0  ;;  %v1258_v1 = vadd.f32 %v1257_v48, %v3380_v15  ;;  %v1371_v10 = vpop.f32.mrf.mxu1  ;;  %v1256_v48 = vadd.f32 %v1255_v4, %v3380_v15  ;;  %v1246_v4 = vadd.f32 %v3083_v59, %v3382_v58  ;;  %v3384_v33 = vld [vmem:[#allocation24_spill] sm:$0xff] }
 0x1c3   : > { %1677 = vmatmul.mubr.bf16.vlgmr.msra.gmra.mxu1 %v2145_v50  ;;  %v1266_v8 = vadd.f32 %v1265_v36, %v3379_v6  ;;  %v2153_v50 = vld [vmem:[%s3263_s3 + $0xc] ss:$16 sps:$4 sm:$0xff]   ;;  %v1461_v32 = vmax.f32 %v1264_v54, 0.0  ;;  %v1252_v36 = vadd.f32 %v3089_v52, %v3381_v20  ;;  %v1238_v54 = vadd.f32 %v3069_v3, %v3384_v33 }
 0x1c4   : > { %v1267_v55 = vpop.f32.mrf.mxu0  ;;  %1698 = vmatpush1.bf16.msra.mxu1 %v1554_v18  ;;  %1686 = vmatprep.mubr.bf16.mxu1 %v2148_v5  ;;  %v1254_v5 = vadd.f32 %v1253_v14, %v3381_v20  ;;  %v1248_v18 = vadd.f32 %v3087_v53, %v3382_v58  ;;  %v1459_v63 = vmax.f32 %v1258_v1, 0.0  ;;  %v1373_v25 = vpop.f32.mrf.mxu1  ;;  %v3383_v14 = vld [vmem:[#allocation21_spill] sm:$0xff]  ;;  %v1236_v59 = vadd.f32 %v3061_v61, %v3384_v33 }
 0x1c5   : > { %v1268_v27 = vadd.f32 %v1267_v55, %v3379_v6  ;;  %1699 = vmatprep.subr.bf16.mxu1 %v1553_v47  ;;  %v1462_v29 = vmax.f32 %v1266_v8, 0.0  ;;  %v1244_v40 = vadd.f32 %v3081_v39, %v3383_v14  ;;  %v1458_v55 = vmax.f32 %v1256_v48, 0.0  ;;  %v3387_v20 = vld [vmem:[#allocation25_spill] sm:$0xff]  ;;  %v3388_v48 = vld [vmem:[#allocation27_spill] sm:$0xff] }
 0x1c6   : > { %v1457_v47 = vmax.f32 %v1254_v5, 0.0  ;;  %v1455_v6 = vmax.f32 %v1248_v18, 0.0  ;;  %v1375_v31 = vpop.f32.mrf.mxu1  ;;  %v1242_v52 = vadd.f32 %v3075_v17, %v3383_v14  ;;  %v1234_v39 = vadd.f32 %v3055_v46, %v3385_v7 }
 0x1c7   : > { %v1463_v37 = vmax.f32 %v1268_v27, 0.0  ;;  %v1548_v53 = vpack.c.bf16 %v1462_v29, %v1460_v56  ;;  %v1453_v8 = vmax.f32 %v1244_v40, 0.0  ;;  %v1454_v15 = vmax.f32 %v1246_v4, 0.0  ;;  %v3389_v29 = vld [vmem:[#allocation28_spill] sm:$0xff] }
 0x1c8   : > { %1700 = vmatpush1.bf16.msra.mxu1 %v1552_v60  ;;  %v1547_v27 = vpack.c.bf16 %v1459_v63, %v1457_v47  ;;  %v1456_v60 = vmax.f32 %v1252_v36, 0.0  ;;  %v1377_v28 = vpop.f32.mrf.mxu1  ;;  %v1232_v17 = vadd.f32 %v3047_v21, %v3385_v7  ;;  %v1224_v46 = vadd.f32 %v3033_v12, %v3387_v20  ;;  %v3390_v36 = vld [vmem:[#allocation29_spill] sm:$0xff]  ;;  %v3391_v47 = vld [vmem:[#allocation30_spill] sm:$0xff] }
 0x1c9   : > { %1701 = vmatprep.subr.bf16.mxu1 %v1551_v24  ;;  %v1549_v34 = vpack.c.bf16 %v1463_v37, %v1461_v32  ;;  %v3386_v37 = vld [vmem:[#allocation26_spill] sm:$0xff]  ;;  %v1451_v24 = vmax.f32 %v1238_v54, 0.0  ;;  %v1449_v5 = vmax.f32 %v1234_v39, 0.0  ;;  %v1450_v32 = vmax.f32 %v1236_v59, 0.0  ;;  %v3392_v54 = vld [vmem:[#allocation31_spill] sm:$0xff] }
 0x1ca   : > { %v1546_v1 = vpack.c.bf16 %v1458_v55, %v1456_v60  ;;  %v1228_v3 = vadd.f32 %v3043_v16, %v3386_v37  ;;  %v1226_v61 = vadd.f32 %v3037_v23, %v3386_v37  ;;  %v1374_v16 = vadd.f32 %v1373_v25, %v3388_v48  ;;  %v3393_v60 = vld [vmem:[#allocation32_spill] sm:$0xff]  ;;  %v3394_v59 = vld [vmem:[#allocation34_spill] sm:$0xff] }
 0x1cb   : > { %1687 = vmatmul.mubr.bf16.gmra.mxu1 %v2150_v57  ;;  %v1545_v57 = vpack.c.bf16 %v1455_v6, %v1453_v8  ;;  %v1378_v58 = vadd.f32 %v1377_v28, %v3389_v29  ;;  %v1543_v63 = vpack.c.bf16 %v1451_v24, %v1449_v5  ;;  %v1222_v21 = vadd.f32 %v3027_v51, %v3387_v20 }
 0x1cc   : > { %1702 = vmatpush1.bf16.msra.mxu1 %v1550_v0  ;;  %1729 = vmatprep.mubr.bf16.mxu1 %v2153_v50  ;;  %v1452_v50 = vmax.f32 %v1242_v52, 0.0  ;;  %v1447_v18 = vmax.f32 %v1228_v3, 0.0  ;;  %v1364_v12 = vadd.f32 %v3106_v43, %v3390_v36  ;;  %v1445_v56 = vmax.f32 %v1224_v46, 0.0  ;;  %v3395_v3 = vld [vmem:[#allocation36_spill] sm:$0xff] }
 0x1cd   : > { %1703 = vmatprep.subr.bf16.mxu1 %v1549_v34  ;;  %v1448_v34 = vmax.f32 %v1232_v17, 0.0  ;;  %v1372_v23 = vadd.f32 %v1371_v10, %v3388_v48  ;;  %v1376_v14 = vadd.f32 %v1375_v31, %v3389_v29  ;;  %v1446_v40 = vmax.f32 %v1226_v61, 0.0  ;;  %v3396_v17 = vld [vmem:[#allocation39_spill] sm:$0xff]  ;;  %v3398_v48 = vld [vmem:[#allocation44_spill] sm:$0xff] }
 0x1ce   : > { %v1544_v0 = vpack.c.bf16 %v1454_v15, %v1452_v50  ;;  %v1368_v4 = vadd.f32 %v3131_v35, %v3391_v47  ;;  %v1505_v55 = vmax.f32 %v1374_v16, 0.0  ;;  %v1541_v33 = vpack.c.bf16 %v1447_v18, %v1445_v56  ;;  %v3399_v16 = vld [vmem:[#allocation53_spill] sm:$0xff] }
 0x1cf   : > { %v1542_v25 = vpack.c.bf16 %v1450_v32, %v1448_v34  ;;  %v1444_v51 = vmax.f32 %v1222_v21, 0.0  ;;  %v1354_v6 = vadd.f32 %v3065_v26, %v3392_v54  ;;  %v1362_v43 = vadd.f32 %v3095_v13, %v3390_v36  ;;  %v3400_v36 = vld [vmem:[#allocation46_spill] sm:$0xff] }
 0x1d0   : > { %1704 = vmatpush1.bf16.msra.mxu1 %v1548_v53  ;;  %v1507_v53 = vmax.f32 %v1378_v58, 0.0  ;;  %v1366_v10 = vadd.f32 %v3121_v30, %v3391_v47  ;;  %v1506_v31 = vmax.f32 %v1376_v14, 0.0  ;;  %v1358_v35 = vadd.f32 %v3085_v45, %v3393_v60 }
 0x1d1   : > { %1705 = vmatprep.subr.bf16.mxu1 %v1547_v27  ;;  %v1504_v27 = vmax.f32 %v1372_v23, 0.0  ;;  %v1540_v52 = vpack.c.bf16 %v1446_v40, %v1444_v51  ;;  %v1501_v7 = vmax.f32 %v1364_v12, 0.0  ;;  %v1503_v39 = vmax.f32 %v1368_v4, 0.0  ;;  %v3402_v4 = vld [vmem:[#allocation55_spill] sm:$0xff]  ;;  %v2154_v51 = vld [vmem:[%s3263_s3 + $0x2c] ss:$16 sps:$4 sm:$0xff]  }
 0x1d2   : > { %v1571_v8 = vpack.c.bf16 %v1507_v53, %v1505_v55  ;;  %v1344_v26 = vadd.f32 %v3021_v11, %v3394_v59  ;;  %v1352_v13 = vadd.f32 %v3051_v41, %v3392_v54  ;;  %v1356_v30 = vadd.f32 %v3077_v2, %v3393_v60  ;;  %v3403_v55 = vld [vmem:[#allocation54_spill] sm:$0xff]  ;;  %v2151_v53 = vld [vmem:[%s3263_s3 + $0x8] ss:$16 sps:$4 sm:$0xff]  }
 0x1d3   : > { %v1500_v15 = vmax.f32 %v1362_v43, 0.0  ;;  %v1570_v37 = vpack.c.bf16 %v1506_v31, %v1504_v27  ;;  %v1348_v45 = vadd.f32 %v3040_v49, %v3395_v3  ;;  %v1497_v24 = vmax.f32 %v1354_v6, 0.0  ;;  %v3397_v49 = vld [vmem:[#allocation41_spill] sm:$0xff] }
 0x1d4   : > { %1706 = vmatpush1.bf16.msra.mxu1 %v1546_v1  ;;  %v1502_v1 = vmax.f32 %v1366_v10, 0.0  ;;  %v1569_v28 = vpack.c.bf16 %v1503_v39, %v1501_v7  ;;  %v1342_v11 = vadd.f32 %v3016_v42, %v3394_v59  ;;  %v1334_v41 = vadd.f32 %v3010_v38, %v3396_v17  ;;  %v2156_v54 = vld [vmem:[%s3263_s3 + $0x28] ss:$16 sps:$4 sm:$0xff]   ;;  %v1587_v7 = vpop.permute.xlu0 %1586 }
 0x1d5   : > { %1707 = vmatprep.subr.bf16.mxu1 %v1545_v57  ;;  %v1499_v57 = vmax.f32 %v1358_v35, 0.0  ;;  %v1346_v2 = vadd.f32 %v3030_v44, %v3395_v3  ;;  %v1496_v50 = vmax.f32 %v1352_v13, 0.0  ;;  %v1498_v20 = vmax.f32 %v1356_v30, 0.0 }
 0x1d6   : > { %v1568_v46 = vpack.c.bf16 %v1502_v1, %v1500_v15  ;;  %v1493_v5 = vmax.f32 %v1344_v26, 0.0  ;;  %v1495_v61 = vmax.f32 %v1348_v45, 0.0  ;;  %v1338_v32 = vadd.f32 %v3014_v9, %v3397_v49 }
 0x1d7   : > { %v1332_v42 = vadd.f32 %v3008_v22, %v3396_v17  ;;  %v1324_v38 = vadd.f32 %v3399_v16, %v3398_v48  ;;  %v1492_v29 = vmax.f32 %v1342_v11, 0.0  ;;  %v1494_v58 = vmax.f32 %v1346_v2, 0.0 }
 0x1d8   : > { %1708 = vmatpush1.bf16.msra.mxu1 %v1544_v0  ;;  %v1567_v0 = vpack.c.bf16 %v1499_v57, %v1497_v24  ;;  %v1336_v44 = vadd.f32 %v3012_v62, %v3397_v49  ;;  %v1566_v18 = vpack.c.bf16 %v1498_v20, %v1496_v50  ;;  %v1565_v21 = vpack.c.bf16 %v1495_v61, %v1493_v5  ;;  %v3401_v62 = vld [vmem:[#allocation56_spill] sm:$0xff] }
 0x1d9   : > { %1709 = vmatprep.subr.bf16.mxu1 %v1543_v63  ;;  %v1489_v63 = vmax.f32 %v1334_v41, 0.0  ;;  %v1491_v34 = vmax.f32 %v1338_v32, 0.0  ;;  %v1328_v9 = vadd.f32 %v3006_v19, %v3400_v36  ;;  %v1488_v12 = vmax.f32 %v1332_v42, 0.0  ;;  %v3404_v19 = vld [vmem:[#allocation52_spill] sm:$0xff] }
 0x1da   : > { %v1564_v22 = vpack.c.bf16 %v1494_v58, %v1492_v29  ;;  %v1490_v56 = vmax.f32 %v1336_v44, 0.0  ;;  %v1485_v23 = vmax.f32 %v1324_v38, 0.0 }
 0x1db   : > { %v1487_v14 = vmax.f32 %v1328_v9, 0.0  ;;  %v1563_v40 = vpack.c.bf16 %v1491_v34, %v1489_v63 }
 0x1dc   : > { %1710 = vmatpush1.bf16.msra.mxu1 %v1542_v25  ;;  %v1562_v25 = vpack.c.bf16 %v1490_v56, %v1488_v12 }
 0x1dd   : > { %1711 = vmatprep.subr.bf16.mxu1 %v1541_v33  ;;  %v1561_v47 = vpack.c.bf16 %v1487_v14, %v1485_v23  ;;  %v3405_v33 = vld [vmem:[#allocation51_spill] sm:$0xff] }
 0x1e0   : > { %1712 = vmatpush1.bf16.msra.mxu1 %v1540_v52 }
 0x1e1   : > { %1713 = vmatprep.subr.bf16.mxu1 %v1571_v8  ;;  %v1592_v8 = vpop.permute.xlu1 %1591 }
 0x1e4   : > { %1714 = vmatpush2.bf16.msra.mxu1 %v1570_v37  ;;  %v1597_v37 = vpop.permute.xlu0 %1596 }
 0x1e5   : > { %1715 = vmatprep.subr.bf16.mxu1 %v1569_v28  ;;  %v1602_v17 = vpop.permute.xlu1 %1601 }
 0x1e8   : > { %1716 = vmatpush2.bf16.msra.mxu1 %v1568_v46 }
 0x1e9   : > { %1717 = vmatprep.subr.bf16.mxu1 %v1567_v0 }
 0x1ec   : > { %1718 = vmatpush2.bf16.msra.mxu1 %v1566_v18 }
 0x1ed   : > { %1719 = vmatprep.subr.bf16.mxu1 %v1565_v21 }
 0x1f0   : > { %1720 = vmatpush2.bf16.msra.mxu1 %v1564_v22 }
 0x1f1   : > { %1721 = vmatprep.subr.bf16.mxu1 %v1563_v40 }
 0x1f4   : > { %1722 = vmatpush2.bf16.msra.mxu1 %v1562_v25 }
 0x1f5   : > { %1723 = vmatprep.subr.bf16.mxu1 %v1561_v47  ;;  %v2220_v47 = vmov 1966171168  }
 0x1f8   : > { %1724 = vmatpush2.bf16.msra.mxu1 %v3401_v62  ;;  %v1780_v62 = vunpack.c.l.s4 %v2220_v47 }
 0x1f9   : > { %1725 = vmatprep.subr.bf16.mxu1 %v3402_v4  ;;  %v1782_v4 = vlaneseq }
 0x1fb   : > { %vm1796_vm1 = vcmp.lt.s32.totalorder %v1782_v4, 256 }
 0x1fc   : > { %1726 = vmatpush2.bf16.msra.mxu1 %v3403_v55 }
 0x1fd   : > { %1727 = vmatprep.subr.bf16.mxu1 %v3404_v19 }
 0x200   : > { %1728 = vmatpush2.bf16.msra.mxu1 %v3405_v33 }
 0x203   : > { %1730 = vmatmul.mubr.bf16.vlgmr.msra.gmra.mxu1 %v2151_v53 }
 0x204   : > { %1739 = vmatprep.mubr.bf16.mxu1 %v2154_v51  ;;  %v1781_v51 = vunpack.c.0.s8 %v1780_v62 }
 0x20b   : > { %1740 = vmatmul.mubr.bf16.gmra.mxu1 %v2156_v54  ;;  %v1783_v54 = vshrl.u32 %v1782_v4, 7 }
 0x283   : > { %v1678_v6 = vpop.f32.mrf.mxu1 }
 0x284   : > { %v1679_v30 = vadd.f32 %v1678_v6, %v1587_v7 }
 0x285   : > { %v1680_v43 = vpop.f32.mrf.mxu1 }
 0x286   : > { %v1681_v45 = vadd.f32 %v1680_v43, %v1587_v7 }
 0x287   : > { %v1682_v10 = vpop.f32.mrf.mxu1 }
 0x288   : > { %v1683_v26 = vadd.f32 %v1682_v10, %v1592_v8 }
 0x289   : > { %v1684_v27 = vpop.f32.mrf.mxu1 }
 0x28a   : > { %v1685_v15 = vadd.f32 %v1684_v27, %v1592_v8  ;;  %v1784_v27 = vsub.s32 %v1781_v51, %v1783_v54 }
 0x28b   : > { %v1688_v31 = vpop.f32.mrf.mxu1 }
 0x28c   : > { %v1689_v24 = vadd.f32 %v1688_v31, %v1597_v37 }
 0x28d   : > { %v1690_v52 = vpop.f32.mrf.mxu1 }
 0x28e   : > { %v1691_v41 = vadd.f32 %v1690_v52, %v1597_v37 }
 0x28f   : > { %v1692_v60 = vpop.f32.mrf.mxu1 }
 0x290   : > { %v1693_v46 = vadd.f32 %v1692_v60, %v1602_v17 }
 0x291   : > { %v1694_v35 = vpop.f32.mrf.mxu1 }
 0x292   : > { %v1695_v42 = vadd.f32 %v1694_v35, %v1602_v17 }
 0x2c3   : > { %v1731_v39 = vpop.f32.mrf.mxu1 }
 0x2c4   : > { %v1732_v57 = vadd.f32 %v1731_v39, %v1679_v30 }
 0x2c5   : > { %v1733_v59 = vpop.f32.mrf.mxu1 }
 0x2c6   : > { %v1734_v2 = vadd.f32 %v1733_v59, %v1681_v45  ;;  %v1750_v61 = vmul.f32 %v1732_v57, %v1732_v57 }
 0x2c7   : > { %v1735_v13 = vpop.f32.mrf.mxu1 }
 0x2c8   : > { %v1736_v1 = vadd.f32 %v1735_v13, %v1683_v26  ;;  %v1751_v16 = vmul.f32 %v1734_v2, %v1734_v2 }
 0x2c9   : > { %v1737_v3 = vpop.f32.mrf.mxu1 }
 0x2ca   : > { %v1738_v28 = vadd.f32 %v1737_v3, %v1685_v15  ;;  %v1752_v50 = vmul.f32 %v1736_v1, %v1736_v1 }
 0x2cb   : > { %v1741_v11 = vpop.f32.mrf.mxu1 }
 0x2cc   : > { %v1742_v20 = vadd.f32 %v1741_v11, %v1689_v24  ;;  %v1753_v49 = vmul.f32 %v1738_v28, %v1738_v28  ;;  %v1758_v38 = vadd.f32 %v1752_v50, %v1750_v61 }
 0x2cd   : > { %v1743_v5 = vpop.f32.mrf.mxu1 }
 0x2ce   : > { %v1754_v32 = vmul.f32 %v1742_v20, %v1742_v20  ;;  %v1744_v0 = vadd.f32 %v1743_v5, %v1691_v41  ;;  %v1767_v18 = vadd.f32 %v1753_v49, %v1751_v16 }
 0x2cf   : > { %v1745_v48 = vpop.f32.mrf.mxu1 }
 0x2d0   : > { %v1755_v29 = vmul.f32 %v1744_v0, %v1744_v0  ;;  %v1746_v58 = vadd.f32 %v1745_v48, %v1693_v46  ;;  %v1759_v63 = vadd.f32 %v1758_v38, %v1754_v32 }
 0x2d1   : > { %v1747_v44 = vpop.f32.mrf.mxu1 }
 0x2d2   : > { %v1756_v21 = vmul.f32 %v1746_v58, %v1746_v58  ;;  %v1748_v34 = vadd.f32 %v1747_v44, %v1695_v42  ;;  %v1768_v36 = vadd.f32 %v1767_v18, %v1755_v29 }
 0x2d4   : > { %v1760_v9 = vadd.f32 %v1759_v63, %v1756_v21  ;;  %v1757_v12 = vmul.f32 %v1748_v34, %v1748_v34 }
 0x2d6   : > { %v1761_v22 = vrot.slane %v1760_v9, 4  ;;  %v1769_v56 = vadd.f32 %v1768_v36, %v1757_v12 }
 0x2d8   : > { %v1762_v23 = vadd.f32 %v1761_v22, %v1760_v9  ;;  %v1770_v14 = vrot.slane %v1769_v56, 4 }
 0x2da   : > { %v1763_v40 = vrot.slane %v1762_v23, 2  ;;  %v1771_v25 = vadd.f32 %v1770_v14, %v1769_v56 }
 0x2dc   : > { %v1764_v55 = vadd.f32 %v1763_v40, %v1762_v23  ;;  %v1772_v19 = vrot.slane %v1771_v25, 2 }
 0x2de   : > { %v1765_v53 = vrot.slane %v1764_v55, 1  ;;  %v1773_v33 = vadd.f32 %v1772_v19, %v1771_v25 }
 0x2e0   : > { %v1774_v6 = vrot.slane %v1773_v33, 1  ;;  %v1766_v43 = vadd.f32 %v1765_v53, %v1764_v55 }
 0x2e2   : > { %v1775_v10 = vadd.f32 %v1774_v6, %v1773_v33 }
 0x2e4   : > { %v1778_v31 = vcombine.low %v1766_v43, %v1775_v10 }
 0x2e6   : > { %v1785_v52 = vrot.slane %v1778_v31, %v1784_v27 }
 0x2e8   : > { %v1792_v60 = vrot.slane %v1785_v52, %v1784_v27 }
 0x2ea   : > { %1798 = vst.msk [vmem:[%s218_s7] sm:$0x3] %vm1796_vm1, %v1792_v60 }
 0x2eb   : > { %2170 = shalt.err (!%p2167_p3)
}
 0x2ec   : > { %s2171_s22 = scalar_lea.hbm %s1812_s11, 32  ;;  %s2175_s25 = scalar_lea.hbm %s3265_s5, 64 }
 0x2ed   : > { %p2172_p4 = scmp.ne.s32.totalorder %s1812_s11, %s2171_s22  ;;  %p2176_p9 = scmp.lt.s32.totalorder %s1812_s11, %s3265_s5 }
 0x2ee   : > { %p2177_p10 = scmp.lt.s32.totalorder %s2175_s25, %s2171_s22 }
 0x2ef   : > { %p2173_p7 = pnand %p2172_p4, %p2287_p5 }
 0x2f0   : > { %p2178_p11 = por %p2177_p10, %p2176_p9 }
 0x2f1   : > { %p2174_p8 = pneg %p2173_p7 }
 0x2f3   : > { %p2179_p12 = pnand %p2178_p11, %p2174_p8 }
 0x2f5   : > { %2182 = shalt.err (!%p2179_p12)
}
 0x2f6   : > { %2070 = dma.vmem_to_hbm [thread:$0]  (%p2287_p5), %s1815_s8, 32, %s1812_s11, %s1800_s12  }
 0x2f7 PF: > { %p2076_p13 = scmp.ge.s32.totalorder %s2217_s21, 2  ;;  %s1826_s6 = sand.u32 1, %s2205_s18  }
 0x2f8   : > { %s1827_s7 = scalar_lea.sflag [#allocation3], %s1826_s6 }
 0x2f9   : > { %p2073_p0 = pnand %p2076_p13, %p2291_p6 }
 0x2fb   : > { %p2074_p1 = pneg %p2073_p0 }
 0x2fd   : > { %2200 = dma.done.wait (%p2074_p1), %s1827_s7, 32  }
 0x2fe   : > { %2202 = vsyncadd (%p2074_p1), %s1827_s7, 4294967264  ;;  %p15_p2 = scmp.ge.s32.totalorder %s2275_s24, 4   ;;  %s3406_s18 = smov %s2209_s19 }
 0x2ff   : > { %s3407_s19 = smov %s2213_s20  ;;  %s3408_s20 = smov %s2285_s27 }
 0x300   : > { %s3409_s21 = smov %s2275_s24  ;;  %17 = sbr.rel (!%p15_p2) target bundleno = 3 (0x3), region = 75 }
 0x305   :  { %1832 = vsyncpa [#allocation3], 1 }
 0x306   :  { %1834 = vsyncpa [#allocation3 + $0x1], 1 }

</bundles_post_ra>
